<compile_context>
chip_gen: v7x
topology: tpu7x:2x2x1
jax: 0.10.0
libtpu: 0.0.40
codegen_flags: <defaults>
</compile_context>

<pallas_src>
import functools
import numpy as np
import jax
import jax.numpy as jnp
from jax.experimental import pallas as pl
from jax.experimental.pallas import tpu as pltpu

NEG_SLOPE = 0.01   # nn.LeakyReLU default
BN_EPS = 1e-5      # nn.BatchNorm2d default


# ------------------------------------------------------------------ helpers
def _interp_matrix_align_corners(n_in, n_out):
    """Row-stochastic interpolation matrix for bilinear, align_corners=True."""
    M = np.zeros((n_out, n_in), dtype=np.float32)
    if n_in == 1:
        M[:, 0] = 1.0
        return M
    for o in range(n_out):
        src = o * (n_in - 1) / (n_out - 1)
        i0 = int(np.floor(src))
        i1 = min(i0 + 1, n_in - 1)
        f = src - i0
        M[o, i0] += 1.0 - f
        M[o, i1] += f
    return M


# ------------------------------------------------------------------ kernel
def _conv3x3_bn_lrelu(x, wmat, scale, shift, W, mask_l, mask_r):
    """3x3 'same' conv + (bias+BN folded) affine + LeakyReLU as one MXU dot.

    x      : (Cin, H*W) bf16, spatial flattened row-major (h, w) in lanes
    wmat   : (Cout, 9*Cin) bf16, K ordered (kh, kw, cin)
    scale  : (Cout, 1) f32 ;  shift : (Cout, 1) f32  (conv bias folded in)
    mask_l : (1, H*W) bool — lanes where a dw=-1 tap is in-bounds
    mask_r : (1, H*W) bool — lanes where a dw=+1 tap is in-bounds
    """
    Cin, P = x.shape
    zpad = jnp.zeros((Cin, W + 1), x.dtype)
    xe = jnp.concatenate([zpad, x, zpad], axis=1)        # in-VMEM zero halo
    zero = jnp.zeros((), x.dtype)
    taps = []
    for dh in (-1, 0, 1):
        for dw in (-1, 0, 1):
            start = (W + 1) + dh * W + dw
            tap = xe[:, start:start + P]                 # static lane slice
            if dw == -1:
                tap = jnp.where(mask_l, tap, zero)       # hoisted mask reuse
            elif dw == 1:
                tap = jnp.where(mask_r, tap, zero)
            taps.append(tap)
    im2col = jnp.concatenate(taps, axis=0)                           # (9*Cin, P) bf16
    acc = jnp.dot(wmat, im2col, preferred_element_type=jnp.float32)  # (Cout, P) f32
    z = acc * scale + shift
    return jnp.maximum(z, NEG_SLOPE * z)                 # LeakyReLU(0.01)


def _up_block_kernel(x1_ref, x2_ref, kron_ref, wa_ref, sa_ref, ta_ref,
                     wb_ref, sb_ref, tb_ref, o_ref, *, W2):
    P2 = x2_ref.shape[2]

    # ---- bilinear 2x upsample of raw x1: ONE kron-matrix MXU dot -----------
    # x1_ref[0]: (C1, H1*W1) bf16 ;  kron_ref: (H1*W1, H2*W2) bf16
    x1up = jnp.dot(x1_ref[0], kron_ref[...],
                   preferred_element_type=jnp.float32)    # (C1, P2) f32

    # ---- channel concat in VMEM: [skip x2 | up(x1) | ones] ------------------
    # The 1x1-conv weights are folded into wmat_a on the host; its bias b1
    # rides on the constant ones channel so conv-A's zero padding stays exact.
    xcat = jnp.concatenate(
        [x2_ref[0], x1up.astype(jnp.bfloat16),
         jnp.ones((1, P2), jnp.bfloat16)], axis=0)        # (C2+C1+1, P2) bf16

    # ---- width-boundary masks, built once, shared by both convs -------------
    w_idx = jax.lax.broadcasted_iota(jnp.int32, (1, P2), 1) % W2
    mask_l = w_idx >= 1           # dw = -1 tap in-bounds
    mask_r = w_idx <= W2 - 2      # dw = +1 tap in-bounds

    z = _conv3x3_bn_lrelu(xcat, wa_ref[...], sa_ref[...], ta_ref[...],
                          W2, mask_l, mask_r)
    # TODO(synk): nn.Dropout is identity at inference; training-mode dropout and
    #             batch-statistics BatchNorm are not implemented (eval semantics).
    z = _conv3x3_bn_lrelu(z.astype(jnp.bfloat16), wb_ref[...], sb_ref[...],
                          tb_ref[...], W2, mask_l, mask_r)
    o_ref[0] = z                                          # (Cout, P2) lane-dense


# ------------------------------------------------------------------ wrapper
def up_block_forward(params, x1_nchw, x2_nchw):
    """UpBlock.forward (mode_upsampling=1) — NCHW in, NCHW out."""
    N, C1, H1, W1 = x1_nchw.shape
    N2, C2, H2, W2 = x2_nchw.shape
    assert N2 == N and H2 == 2 * H1 and W2 == 2 * W1
    P1, P2 = H1 * W1, H2 * W2
    Cout = params["wmat_b"].shape[0]
    Cin_eff = C2 + C1 + 1
    assert params["wmat_a"].shape == (Cout, 9 * Cin_eff)

    # Lane-dense bf16 activations (full-lane loads, half the HBM bytes).
    x1_f = x1_nchw.reshape(N, C1, P1).astype(jnp.bfloat16)
    x2_f = x2_nchw.reshape(N, C2, P2).astype(jnp.bfloat16)

    flops = N * (2 * C1 * P1 * P2                 # kron upsample dot
                 + 2 * Cout * 9 * Cin_eff * P2    # conv A (1x1 folded in)
                 + 2 * Cout * 9 * Cout * P2       # conv B
                 + 8 * Cout * P2)                 # BN affine + LeakyReLU
    bytes_accessed = (2 * (x1_f.size + x2_f.size + params["kronT"].size
                           + params["wmat_a"].size + params["wmat_b"].size)
                      + 4 * (4 * Cout + N * Cout * P2))

    kernel = functools.partial(_up_block_kernel, W2=W2)

    out = pl.pallas_call(
        kernel,
        out_shape=jax.ShapeDtypeStruct((N, Cout, P2), jnp.float32),
        grid=(N,),
        in_specs=[
            pl.BlockSpec((1, C1, P1), lambda n: (n, 0, 0)),        # x1 (bf16)
            pl.BlockSpec((1, C2, P2), lambda n: (n, 0, 0)),        # x2 (bf16)
            pl.BlockSpec((P1, P2), lambda n: (0, 0)),              # kron^T (bf16)
            pl.BlockSpec((Cout, 9 * Cin_eff), lambda n: (0, 0)),   # wmat_a (bf16)
            pl.BlockSpec((Cout, 1), lambda n: (0, 0)),             # scale_a
            pl.BlockSpec((Cout, 1), lambda n: (0, 0)),             # shift_a
            pl.BlockSpec((Cout, 9 * Cout), lambda n: (0, 0)),      # wmat_b (bf16)
            pl.BlockSpec((Cout, 1), lambda n: (0, 0)),             # scale_b
            pl.BlockSpec((Cout, 1), lambda n: (0, 0)),             # shift_b
        ],
        out_specs=pl.BlockSpec((1, Cout, P2), lambda n: (n, 0, 0)),
        compiler_params=pltpu.CompilerParams(
            dimension_semantics=("parallel",),
            vmem_limit_bytes=8 * 1024 * 1024),
        cost_estimate=pl.CostEstimate(flops=flops, transcendentals=0,
                                      bytes_accessed=bytes_accessed),
    )(x1_f, x2_f, params["kronT"], params["wmat_a"], params["scale_a"],
      params["shift_a"], params["wmat_b"], params["scale_b"], params["shift_b"])
    return out.reshape(N, Cout, H2, W2)


def prepare_params(w1, b1, Mh, Mw, w_a, b_a, bn1, w_b, b_b, bn2):
    """Host prep: kron upsample matrix, 1x1-conv fold, BN(+bias) fold, im2col order."""
    C2, C1 = w1.shape

    # 2x bilinear upsample (align_corners=True), flattened:
    #   x1up_flat = x1_flat @ kronT,   kronT = kron(Mh, Mw)^T  (H1*W1, H2*W2)
    kronT = jnp.asarray(np.kron(np.asarray(Mh), np.asarray(Mw)).T,
                        dtype=jnp.bfloat16)

    # Fold the 1x1 conv weights into conv-A; the 1x1 bias goes onto an extra
    # constant "ones" channel (exact under conv-A's zero border padding).
    wa_x2, wa_up = w_a[:, :C2], w_a[:, C2:]
    wfold = jnp.einsum('ochw,ci->oihw', wa_up, w1)           # (Cout, C1, 3, 3)
    wones = jnp.einsum('ochw,c->ohw', wa_up, b1)[:, None]    # (Cout, 1, 3, 3)
    w_a_eff = jnp.concatenate([wa_x2, wfold, wones], axis=1) # (Cout, C2+C1+1, 3, 3)

    def fold_bn(w_oihw, b, bn):
        gamma, beta, mean, var = bn
        scale = gamma / jnp.sqrt(var + BN_EPS)
        shift = (b - mean) * scale + beta
        cout, cin = w_oihw.shape[:2]
        # wmat[o, (kh*3+kw)*cin + ci] = w[o, ci, kh, kw]  (matches im2col order)
        wmat = jnp.transpose(w_oihw, (0, 2, 3, 1)).reshape(cout, 9 * cin)
        return (wmat.astype(jnp.bfloat16),
                scale.reshape(cout, 1).astype(jnp.float32),
                shift.reshape(cout, 1).astype(jnp.float32))

    wmat_a, scale_a, shift_a = fold_bn(w_a_eff, b_a, bn1)
    wmat_b, scale_b, shift_b = fold_bn(w_b, b_b, bn2)
    return dict(kronT=kronT,
                wmat_a=wmat_a, scale_a=scale_a, shift_a=shift_a,
                wmat_b=wmat_b, scale_b=scale_b, shift_b=shift_b)


# ------------------------------------------------------------------ pure-JAX reference
def reference_forward(x1, x2, w1, b1, Mh, Mw, w_a, b_a, bn1, w_b, b_b, bn2):
    y = jnp.einsum('oc,nchw->nohw', w1, x1) + b1[None, :, None, None]
    y = jnp.einsum('oh,nchw->ncow', Mh, y)        # H upsample
    y = jnp.einsum('pw,nchw->nchp', Mw, y)        # W upsample
    x = jnp.concatenate([x2, y], axis=1)

    def conv_bn_lrelu(x, w, b, bn):
        gamma, beta, mean, var = bn
        z = jax.lax.conv_general_dilated(
            x, w, (1, 1), 'SAME',
            dimension_numbers=('NCHW', 'OIHW', 'NCHW'))
        z = z + b[None, :, None, None]
        z = ((z - mean[None, :, None, None])
             / jnp.sqrt(var + BN_EPS)[None, :, None, None]
             * gamma[None, :, None, None] + beta[None, :, None, None])
        return jnp.where(z >= 0, z, NEG_SLOPE * z)

    x = conv_bn_lrelu(x, w_a, b_a, bn1)
    x = conv_bn_lrelu(x, w_b, b_b, bn2)
    return x


# ------------------------------------------------------------------ main
if __name__ == "__main__":
    # UpBlock(in_channels1=16, in_channels2=8, out_channels=8, dropout_p=0.0,
    #         mode_upsampling=1), small spatial size.
    N, C1, C2, COUT = 2, 16, 8, 8
    H1 = W1 = 8
    H2, W2 = 2 * H1, 2 * W1

    key = jax.random.PRNGKey(0)
    ks = jax.random.split(key, 10)

    def bf16r(a):   # pre-round to bf16-representable so kernel & ref share values
        return a.astype(jnp.bfloat16).astype(jnp.float32)

    x1 = bf16r(jax.random.normal(ks[0], (N, C1, H1, W1), jnp.float32))   # NCHW
    x2 = bf16r(jax.random.normal(ks[1], (N, C2, H2, W2), jnp.float32))   # NCHW

    w1 = bf16r(jax.random.normal(ks[2], (C2, C1), jnp.float32) * 0.1)    # conv1x1 (O, I)
    b1 = bf16r(jax.random.normal(ks[3], (C2,), jnp.float32) * 0.1)

    ccat = 2 * C2
    w_a = bf16r(jax.random.normal(ks[4], (COUT, ccat, 3, 3), jnp.float32) * 0.1)
    b_a = jax.random.normal(ks[5], (COUT,), jnp.float32) * 0.1
    w_b = bf16r(jax.random.normal(ks[6], (COUT, COUT, 3, 3), jnp.float32) * 0.1)
    b_b = jax.random.normal(ks[7], (COUT,), jnp.float32) * 0.1

    def bn_params(k, c):
        kk = jax.random.split(k, 4)
        gamma = 1.0 + 0.1 * jax.random.normal(kk[0], (c,), jnp.float32)
        beta = 0.1 * jax.random.normal(kk[1], (c,), jnp.float32)
        mean = 0.1 * jax.random.normal(kk[2], (c,), jnp.float32)
        var = 1.0 + 0.1 * jnp.abs(jax.random.normal(kk[3], (c,), jnp.float32))
        return (gamma, beta, mean, var)

    bn1 = bn_params(ks[8], COUT)
    bn2 = bn_params(ks[9], COUT)

    Mh = jnp.asarray(_interp_matrix_align_corners(H1, H2))
    Mw = jnp.asarray(_interp_matrix_align_corners(W1, W2))

    params = prepare_params(w1, b1, Mh, Mw, w_a, b_a, bn1, w_b, b_b, bn2)

    out = jax.block_until_ready(up_block_forward(params, x1, x2))
    ref = jax.block_until_ready(
        reference_forward(x1, x2, w1, b1, Mh, Mw, w_a, b_a, bn1, w_b, b_b, bn2))

    assert out.shape == (N, COUT, H2, W2), out.shape
    # Tolerance accounts for bf16 activations / kron matrix / folded weights in
    # all of the kernel's MXU dots vs the pure-f32 reference.
    np.testing.assert_allclose(np.asarray(out), np.asarray(ref),
                               atol=3e-2, rtol=3e-2)
    print("KERNEL_OK")
</pallas_src>

<mosaic_0001>
module attributes {stable_mosaic.version = 11 : i64} {
  func.func @_up_block_kernel(%arg0: i32, %arg1: memref<1x16x64xbf16, #tpu.memory_space<vmem>>, %arg2: memref<1x8x256xbf16, #tpu.memory_space<vmem>>, %arg3: memref<64x256xbf16, #tpu.memory_space<vmem>>, %arg4: memref<8x225xbf16, #tpu.memory_space<vmem>>, %arg5: memref<8x1xf32, #tpu.memory_space<vmem>>, %arg6: memref<8x1xf32, #tpu.memory_space<vmem>>, %arg7: memref<8x72xbf16, #tpu.memory_space<vmem>>, %arg8: memref<8x1xf32, #tpu.memory_space<vmem>>, %arg9: memref<8x1xf32, #tpu.memory_space<vmem>>, %arg10: memref<1x8x256xf32, #tpu.memory_space<vmem>>) attributes {dimension_semantics = [#tpu.dimension_semantics<parallel>], iteration_bounds = array<i64: 2>, scalar_prefetch = 0 : i64, scratch_operands = 0 : i64, tpu.core_type = #tpu.core_type<tc>, window_params = [{transform_indices = @transform_0, window_bounds = array<i64: 1, 16, 64>}, {transform_indices = @transform_1, window_bounds = array<i64: 1, 8, 256>}, {pipeline_mode = #tpu.pipeline_mode<synchronous>, transform_indices = @transform_2, window_bounds = array<i64: 64, 256>}, {pipeline_mode = #tpu.pipeline_mode<synchronous>, transform_indices = @transform_3, window_bounds = array<i64: 8, 225>}, {pipeline_mode = #tpu.pipeline_mode<synchronous>, transform_indices = @transform_4, window_bounds = array<i64: 8, 1>}, {pipeline_mode = #tpu.pipeline_mode<synchronous>, transform_indices = @transform_5, window_bounds = array<i64: 8, 1>}, {pipeline_mode = #tpu.pipeline_mode<synchronous>, transform_indices = @transform_6, window_bounds = array<i64: 8, 72>}, {pipeline_mode = #tpu.pipeline_mode<synchronous>, transform_indices = @transform_7, window_bounds = array<i64: 8, 1>}, {pipeline_mode = #tpu.pipeline_mode<synchronous>, transform_indices = @transform_8, window_bounds = array<i64: 8, 1>}, {transform_indices = @transform_9, window_bounds = array<i64: 1, 8, 256>}]} {
    %c0 = arith.constant 0 : index
    %c0_0 = arith.constant 0 : index
    %c0_1 = arith.constant 0 : index
    %0 = vector.load %arg1[%c0, %c0_0, %c0_1] : memref<1x16x64xbf16, #tpu.memory_space<vmem>>, vector<1x16x64xbf16>
    %1 = vector.shape_cast %0 : vector<1x16x64xbf16> to vector<16x64xbf16>
    %c0_2 = arith.constant 0 : index
    %c0_3 = arith.constant 0 : index
    %2 = vector.load %arg3[%c0_2, %c0_3] : memref<64x256xbf16, #tpu.memory_space<vmem>>, vector<64x256xbf16>
    %cst = arith.constant dense<0.000000e+00> : vector<16x256xf32>
    %3 = tpu.matmul %1, %2, %cst {dimension_numbers = #tpu.dot_dimension_numbers<[1], [0], [0], [1], [0, 0, 1, 1], [], []>} : vector<16x64xbf16>, vector<64x256xbf16>, vector<16x256xf32> -> vector<16x256xf32>
    %c0_4 = arith.constant 0 : index
    %c0_5 = arith.constant 0 : index
    %c0_6 = arith.constant 0 : index
    %4 = vector.load %arg2[%c0_4, %c0_5, %c0_6] : memref<1x8x256xbf16, #tpu.memory_space<vmem>>, vector<1x8x256xbf16>
    %5 = vector.shape_cast %4 : vector<1x8x256xbf16> to vector<8x256xbf16>
    %6 = arith.truncf %3 : vector<16x256xf32> to vector<16x256xbf16>
    %cst_7 = arith.constant 1.000000e+00 : bf16
    %7 = vector.broadcast %cst_7 : bf16 to vector<1x256xbf16>
    %8 = tpu.concatenate %5, %6, %7 in 0 : vector<8x256xbf16>, vector<16x256xbf16>, vector<1x256xbf16> -> vector<25x256xbf16>
    %9 = tpu.iota {dimensions = array<i32: 1>} : vector<1x256xi32>
    %c16_i32 = arith.constant 16 : i32
    %c0_i32 = arith.constant 0 : i32
    %10 = arith.cmpi eq, %c16_i32, %c0_i32 : i32
    %c1_i32 = arith.constant 1 : i32
    %11 = arith.select %10, %c1_i32, %c16_i32 : i32
    %12 = vector.broadcast %11 : i32 to vector<1x256xi32>
    %13 = arith.remsi %9, %12 : vector<1x256xi32>
    %c0_i32_8 = arith.constant 0 : i32
    %14 = vector.broadcast %c0_i32_8 : i32 to vector<1x256xi32>
    %15 = arith.cmpi ne, %13, %14 : vector<1x256xi32>
    %c0_i32_9 = arith.constant 0 : i32
    %16 = vector.broadcast %c0_i32_9 : i32 to vector<1x256xi32>
    %17 = arith.cmpi slt, %13, %16 : vector<1x256xi32>
    %c0_i32_10 = arith.constant 0 : i32
    %18 = arith.cmpi slt, %11, %c0_i32_10 : i32
    %19 = vector.broadcast %18 : i1 to vector<1x256xi1>
    %20 = vector.broadcast %19 : vector<1x256xi1> to vector<1x256xi1>
    %21 = arith.xori %17, %20 : vector<1x256xi1>
    %22 = arith.andi %21, %15 : vector<1x256xi1>
    %23 = vector.broadcast %11 : i32 to vector<1x256xi32>
    %24 = arith.addi %13, %23 : vector<1x256xi32>
    %25 = arith.select %22, %24, %13 : vector<1x256xi1>, vector<1x256xi32>
    %c1_i32_11 = arith.constant 1 : i32
    %26 = vector.broadcast %c1_i32_11 : i32 to vector<1x256xi32>
    %27 = arith.cmpi sge, %25, %26 : vector<1x256xi32>
    %c14_i32 = arith.constant 14 : i32
    %28 = vector.broadcast %c14_i32 : i32 to vector<1x256xi32>
    %29 = arith.cmpi sle, %25, %28 : vector<1x256xi32>
    %c0_12 = arith.constant 0 : index
    %c0_13 = arith.constant 0 : index
    %30 = vector.load %arg4[%c0_12, %c0_13] : memref<8x225xbf16, #tpu.memory_space<vmem>>, vector<8x225xbf16>
    %c0_14 = arith.constant 0 : index
    %c0_15 = arith.constant 0 : index
    %31 = vector.load %arg5[%c0_14, %c0_15] : memref<8x1xf32, #tpu.memory_space<vmem>>, vector<8x1xf32>
    %c0_16 = arith.constant 0 : index
    %c0_17 = arith.constant 0 : index
    %32 = vector.load %arg6[%c0_16, %c0_17] : memref<8x1xf32, #tpu.memory_space<vmem>>, vector<8x1xf32>
    %cst_18 = arith.constant 0.000000e+00 : bf16
    %33 = vector.broadcast %cst_18 : bf16 to vector<25x17xbf16>
    %34 = tpu.concatenate %33, %8, %33 in 1 : vector<25x17xbf16>, vector<25x256xbf16>, vector<25x17xbf16> -> vector<25x290xbf16>
    %35 = vector.extract_strided_slice %34 {offsets = [0, 0], sizes = [25, 256], strides = [1, 1]} : vector<25x290xbf16> to vector<25x256xbf16>
    %cst_19 = arith.constant 0.000000e+00 : bf16
    %36 = vector.shape_cast %27 : vector<1x256xi1> to vector<1x256xi1>
    %37 = vector.broadcast %36 : vector<1x256xi1> to vector<25x256xi1>
    %38 = vector.broadcast %cst_19 : bf16 to vector<25x256xbf16>
    %39 = arith.select %37, %35, %38 : vector<25x256xi1>, vector<25x256xbf16>
    %40 = vector.extract_strided_slice %34 {offsets = [0, 1], sizes = [25, 256], strides = [1, 1]} : vector<25x290xbf16> to vector<25x256xbf16>
    %41 = vector.extract_strided_slice %34 {offsets = [0, 2], sizes = [25, 256], strides = [1, 1]} : vector<25x290xbf16> to vector<25x256xbf16>
    %cst_20 = arith.constant 0.000000e+00 : bf16
    %42 = vector.shape_cast %29 : vector<1x256xi1> to vector<1x256xi1>
    %43 = vector.broadcast %42 : vector<1x256xi1> to vector<25x256xi1>
    %44 = vector.broadcast %cst_20 : bf16 to vector<25x256xbf16>
    %45 = arith.select %43, %41, %44 : vector<25x256xi1>, vector<25x256xbf16>
    %46 = vector.extract_strided_slice %34 {offsets = [0, 16], sizes = [25, 256], strides = [1, 1]} : vector<25x290xbf16> to vector<25x256xbf16>
    %cst_21 = arith.constant 0.000000e+00 : bf16
    %47 = vector.shape_cast %27 : vector<1x256xi1> to vector<1x256xi1>
    %48 = vector.broadcast %47 : vector<1x256xi1> to vector<25x256xi1>
    %49 = vector.broadcast %cst_21 : bf16 to vector<25x256xbf16>
    %50 = arith.select %48, %46, %49 : vector<25x256xi1>, vector<25x256xbf16>
    %51 = vector.extract_strided_slice %34 {offsets = [0, 17], sizes = [25, 256], strides = [1, 1]} : vector<25x290xbf16> to vector<25x256xbf16>
    %52 = vector.extract_strided_slice %34 {offsets = [0, 18], sizes = [25, 256], strides = [1, 1]} : vector<25x290xbf16> to vector<25x256xbf16>
    %cst_22 = arith.constant 0.000000e+00 : bf16
    %53 = vector.shape_cast %29 : vector<1x256xi1> to vector<1x256xi1>
    %54 = vector.broadcast %53 : vector<1x256xi1> to vector<25x256xi1>
    %55 = vector.broadcast %cst_22 : bf16 to vector<25x256xbf16>
    %56 = arith.select %54, %52, %55 : vector<25x256xi1>, vector<25x256xbf16>
    %57 = vector.extract_strided_slice %34 {offsets = [0, 32], sizes = [25, 256], strides = [1, 1]} : vector<25x290xbf16> to vector<25x256xbf16>
    %cst_23 = arith.constant 0.000000e+00 : bf16
    %58 = vector.shape_cast %27 : vector<1x256xi1> to vector<1x256xi1>
    %59 = vector.broadcast %58 : vector<1x256xi1> to vector<25x256xi1>
    %60 = vector.broadcast %cst_23 : bf16 to vector<25x256xbf16>
    %61 = arith.select %59, %57, %60 : vector<25x256xi1>, vector<25x256xbf16>
    %62 = vector.extract_strided_slice %34 {offsets = [0, 33], sizes = [25, 256], strides = [1, 1]} : vector<25x290xbf16> to vector<25x256xbf16>
    %63 = vector.extract_strided_slice %34 {offsets = [0, 34], sizes = [25, 256], strides = [1, 1]} : vector<25x290xbf16> to vector<25x256xbf16>
    %cst_24 = arith.constant 0.000000e+00 : bf16
    %64 = vector.shape_cast %29 : vector<1x256xi1> to vector<1x256xi1>
    %65 = vector.broadcast %64 : vector<1x256xi1> to vector<25x256xi1>
    %66 = vector.broadcast %cst_24 : bf16 to vector<25x256xbf16>
    %67 = arith.select %65, %63, %66 : vector<25x256xi1>, vector<25x256xbf16>
    %68 = tpu.concatenate %39, %40, %45, %50, %51, %56, %61, %62, %67 in 0 : vector<25x256xbf16>, vector<25x256xbf16>, vector<25x256xbf16>, vector<25x256xbf16>, vector<25x256xbf16>, vector<25x256xbf16>, vector<25x256xbf16>, vector<25x256xbf16>, vector<25x256xbf16> -> vector<225x256xbf16>
    %cst_25 = arith.constant dense<0.000000e+00> : vector<8x256xf32>
    %69 = tpu.matmul %30, %68, %cst_25 {dimension_numbers = #tpu.dot_dimension_numbers<[1], [0], [0], [1], [0, 0, 1, 1], [], []>} : vector<8x225xbf16>, vector<225x256xbf16>, vector<8x256xf32> -> vector<8x256xf32>
    %70 = vector.broadcast %31 : vector<8x1xf32> to vector<8x256xf32>
    %71 = arith.mulf %69, %70 : vector<8x256xf32>
    %72 = vector.broadcast %32 : vector<8x1xf32> to vector<8x256xf32>
    %73 = arith.addf %71, %72 : vector<8x256xf32>
    %cst_26 = arith.constant 0.00999999977 : f32
    %74 = vector.broadcast %cst_26 : f32 to vector<8x256xf32>
    %75 = arith.mulf %74, %73 : vector<8x256xf32>
    %76 = arith.maximumf %73, %75 : vector<8x256xf32>
    %77 = arith.truncf %76 : vector<8x256xf32> to vector<8x256xbf16>
    %c0_27 = arith.constant 0 : index
    %c0_28 = arith.constant 0 : index
    %78 = vector.load %arg7[%c0_27, %c0_28] : memref<8x72xbf16, #tpu.memory_space<vmem>>, vector<8x72xbf16>
    %c0_29 = arith.constant 0 : index
    %c0_30 = arith.constant 0 : index
    %79 = vector.load %arg8[%c0_29, %c0_30] : memref<8x1xf32, #tpu.memory_space<vmem>>, vector<8x1xf32>
    %c0_31 = arith.constant 0 : index
    %c0_32 = arith.constant 0 : index
    %80 = vector.load %arg9[%c0_31, %c0_32] : memref<8x1xf32, #tpu.memory_space<vmem>>, vector<8x1xf32>
    %cst_33 = arith.constant 0.000000e+00 : bf16
    %81 = vector.broadcast %cst_33 : bf16 to vector<8x17xbf16>
    %82 = tpu.concatenate %81, %77, %81 in 1 : vector<8x17xbf16>, vector<8x256xbf16>, vector<8x17xbf16> -> vector<8x290xbf16>
    %83 = vector.extract_strided_slice %82 {offsets = [0, 0], sizes = [8, 256], strides = [1, 1]} : vector<8x290xbf16> to vector<8x256xbf16>
    %cst_34 = arith.constant 0.000000e+00 : bf16
    %84 = vector.shape_cast %27 : vector<1x256xi1> to vector<1x256xi1>
    %85 = vector.broadcast %84 : vector<1x256xi1> to vector<8x256xi1>
    %86 = vector.broadcast %cst_34 : bf16 to vector<8x256xbf16>
    %87 = arith.select %85, %83, %86 : vector<8x256xi1>, vector<8x256xbf16>
    %88 = vector.extract_strided_slice %82 {offsets = [0, 1], sizes = [8, 256], strides = [1, 1]} : vector<8x290xbf16> to vector<8x256xbf16>
    %89 = vector.extract_strided_slice %82 {offsets = [0, 2], sizes = [8, 256], strides = [1, 1]} : vector<8x290xbf16> to vector<8x256xbf16>
    %cst_35 = arith.constant 0.000000e+00 : bf16
    %90 = vector.shape_cast %29 : vector<1x256xi1> to vector<1x256xi1>
    %91 = vector.broadcast %90 : vector<1x256xi1> to vector<8x256xi1>
    %92 = vector.broadcast %cst_35 : bf16 to vector<8x256xbf16>
    %93 = arith.select %91, %89, %92 : vector<8x256xi1>, vector<8x256xbf16>
    %94 = vector.extract_strided_slice %82 {offsets = [0, 16], sizes = [8, 256], strides = [1, 1]} : vector<8x290xbf16> to vector<8x256xbf16>
    %cst_36 = arith.constant 0.000000e+00 : bf16
    %95 = vector.shape_cast %27 : vector<1x256xi1> to vector<1x256xi1>
    %96 = vector.broadcast %95 : vector<1x256xi1> to vector<8x256xi1>
    %97 = vector.broadcast %cst_36 : bf16 to vector<8x256xbf16>
    %98 = arith.select %96, %94, %97 : vector<8x256xi1>, vector<8x256xbf16>
    %99 = vector.extract_strided_slice %82 {offsets = [0, 17], sizes = [8, 256], strides = [1, 1]} : vector<8x290xbf16> to vector<8x256xbf16>
    %100 = vector.extract_strided_slice %82 {offsets = [0, 18], sizes = [8, 256], strides = [1, 1]} : vector<8x290xbf16> to vector<8x256xbf16>
    %cst_37 = arith.constant 0.000000e+00 : bf16
    %101 = vector.shape_cast %29 : vector<1x256xi1> to vector<1x256xi1>
    %102 = vector.broadcast %101 : vector<1x256xi1> to vector<8x256xi1>
    %103 = vector.broadcast %cst_37 : bf16 to vector<8x256xbf16>
    %104 = arith.select %102, %100, %103 : vector<8x256xi1>, vector<8x256xbf16>
    %105 = vector.extract_strided_slice %82 {offsets = [0, 32], sizes = [8, 256], strides = [1, 1]} : vector<8x290xbf16> to vector<8x256xbf16>
    %cst_38 = arith.constant 0.000000e+00 : bf16
    %106 = vector.shape_cast %27 : vector<1x256xi1> to vector<1x256xi1>
    %107 = vector.broadcast %106 : vector<1x256xi1> to vector<8x256xi1>
    %108 = vector.broadcast %cst_38 : bf16 to vector<8x256xbf16>
    %109 = arith.select %107, %105, %108 : vector<8x256xi1>, vector<8x256xbf16>
    %110 = vector.extract_strided_slice %82 {offsets = [0, 33], sizes = [8, 256], strides = [1, 1]} : vector<8x290xbf16> to vector<8x256xbf16>
    %111 = vector.extract_strided_slice %82 {offsets = [0, 34], sizes = [8, 256], strides = [1, 1]} : vector<8x290xbf16> to vector<8x256xbf16>
    %cst_39 = arith.constant 0.000000e+00 : bf16
    %112 = vector.shape_cast %29 : vector<1x256xi1> to vector<1x256xi1>
    %113 = vector.broadcast %112 : vector<1x256xi1> to vector<8x256xi1>
    %114 = vector.broadcast %cst_39 : bf16 to vector<8x256xbf16>
    %115 = arith.select %113, %111, %114 : vector<8x256xi1>, vector<8x256xbf16>
    %116 = tpu.concatenate %87, %88, %93, %98, %99, %104, %109, %110, %115 in 0 : vector<8x256xbf16>, vector<8x256xbf16>, vector<8x256xbf16>, vector<8x256xbf16>, vector<8x256xbf16>, vector<8x256xbf16>, vector<8x256xbf16>, vector<8x256xbf16>, vector<8x256xbf16> -> vector<72x256xbf16>
    %cst_40 = arith.constant dense<0.000000e+00> : vector<8x256xf32>
    %117 = tpu.matmul %78, %116, %cst_40 {dimension_numbers = #tpu.dot_dimension_numbers<[1], [0], [0], [1], [0, 0, 1, 1], [], []>} : vector<8x72xbf16>, vector<72x256xbf16>, vector<8x256xf32> -> vector<8x256xf32>
    %118 = vector.broadcast %79 : vector<8x1xf32> to vector<8x256xf32>
    %119 = arith.mulf %117, %118 : vector<8x256xf32>
    %120 = vector.broadcast %80 : vector<8x1xf32> to vector<8x256xf32>
    %121 = arith.addf %119, %120 : vector<8x256xf32>
    %cst_41 = arith.constant 0.00999999977 : f32
    %122 = vector.broadcast %cst_41 : f32 to vector<8x256xf32>
    %123 = arith.mulf %122, %121 : vector<8x256xf32>
    %124 = arith.maximumf %121, %123 : vector<8x256xf32>
    %c0_42 = arith.constant 0 : index
    %c0_43 = arith.constant 0 : index
    %c0_44 = arith.constant 0 : index
    %125 = vector.load %arg10[%c0_42, %c0_43, %c0_44] : memref<1x8x256xf32, #tpu.memory_space<vmem>>, vector<1x8x256xf32>
    %126 = vector.shape_cast %125 : vector<1x8x256xf32> to vector<8x256xf32>
    %127 = vector.shape_cast %124 : vector<8x256xf32> to vector<1x8x256xf32>
    tpu.vector_store %arg10[%c0_42, %c0_43, %c0_44], %127 {strides = array<i32>} : memref<1x8x256xf32, #tpu.memory_space<vmem>>, vector<1x8x256xf32>,
    return
  }
  func.func @transform_0(%arg0: i32) -> (i32, i32, i32) {
    %c0_i32 = arith.constant 0 : i32
    %c0_i32_0 = arith.constant 0 : i32
    %c0_i32_1 = arith.constant 0 : i32
    return %arg0, %c0_i32, %c0_i32_0 : i32, i32, i32
  }
  func.func @transform_1(%arg0: i32) -> (i32, i32, i32) {
    %c0_i32 = arith.constant 0 : i32
    %c0_i32_0 = arith.constant 0 : i32
    %c0_i32_1 = arith.constant 0 : i32
    return %arg0, %c0_i32, %c0_i32_0 : i32, i32, i32
  }
  func.func @transform_2(%arg0: i32) -> (i32, i32) {
    %c0_i32 = arith.constant 0 : i32
    %c0_i32_0 = arith.constant 0 : i32
    %c0_i32_1 = arith.constant 0 : i32
    return %c0_i32, %c0_i32_0 : i32, i32
  }
  func.func @transform_3(%arg0: i32) -> (i32, i32) {
    %c0_i32 = arith.constant 0 : i32
    %c0_i32_0 = arith.constant 0 : i32
    %c0_i32_1 = arith.constant 0 : i32
    return %c0_i32, %c0_i32_0 : i32, i32
  }
  func.func @transform_4(%arg0: i32) -> (i32, i32) {
    %c0_i32 = arith.constant 0 : i32
    %c0_i32_0 = arith.constant 0 : i32
    %c0_i32_1 = arith.constant 0 : i32
    return %c0_i32, %c0_i32_0 : i32, i32
  }
  func.func @transform_5(%arg0: i32) -> (i32, i32) {
    %c0_i32 = arith.constant 0 : i32
    %c0_i32_0 = arith.constant 0 : i32
    %c0_i32_1 = arith.constant 0 : i32
    return %c0_i32, %c0_i32_0 : i32, i32
  }
  func.func @transform_6(%arg0: i32) -> (i32, i32) {
    %c0_i32 = arith.constant 0 : i32
    %c0_i32_0 = arith.constant 0 : i32
    %c0_i32_1 = arith.constant 0 : i32
    return %c0_i32, %c0_i32_0 : i32, i32
  }
  func.func @transform_7(%arg0: i32) -> (i32, i32) {
    %c0_i32 = arith.constant 0 : i32
    %c0_i32_0 = arith.constant 0 : i32
    %c0_i32_1 = arith.constant 0 : i32
    return %c0_i32, %c0_i32_0 : i32, i32
  }
  func.func @transform_8(%arg0: i32) -> (i32, i32) {
    %c0_i32 = arith.constant 0 : i32
    %c0_i32_0 = arith.constant 0 : i32
    %c0_i32_1 = arith.constant 0 : i32
    return %c0_i32, %c0_i32_0 : i32, i32
  }
  func.func @transform_9(%arg0: i32) -> (i32, i32, i32) {
    %c0_i32 = arith.constant 0 : i32
    %c0_i32_0 = arith.constant 0 : i32
    %c0_i32_1 = arith.constant 0 : i32
    return %arg0, %c0_i32, %c0_i32_0 : i32, i32, i32
  }
}

</mosaic_0001>

<bundles_post_ra>
// kernel: tpu_custom_call.1
= control target key start
LH: loop header
LB: loop body
LE: loop exit
PB: predicated region body
PF: predicated region fallthrough
CT: control target
= control target key end

     0   :  { %14 = vsyncpa [#allocation3], 0  ;;  %s2669_s0 = inlined_call_operand.vmem [shape: bf16[2,16,64], index: 0, kind: input, shape index: {}]   ;;  %s2670_s1 = inlined_call_operand.vmem [shape: bf16[2,8,256], index: 1, kind: input, shape index: {}]   ;;  %s2671_s2 = inlined_call_operand.hbm [shape: bf16[64,256], index: 2, kind: input, shape index: {}]   ;;  %s2672_s3 = inlined_call_operand.vmem [shape: bf16[8,225], index: 3, kind: input, shape index: {}]   ;;  %s2673_s4 = inlined_call_operand.vmem [shape: f32[8,1], index: 4, kind: input, shape index: {}]   ;;  %s2674_s5 = inlined_call_operand.vmem [shape: f32[8,1], index: 5, kind: input, shape index: {}]   ;;  %s2675_s6 = inlined_call_operand.vmem [shape: bf16[8,72], index: 6, kind: input, shape index: {}]   ;;  %s2676_s7 = inlined_call_operand.vmem [shape: f32[8,1], index: 7, kind: input, shape index: {}]   ;;  %s2677_s8 = inlined_call_operand.vmem [shape: f32[8,1], index: 8, kind: input, shape index: {}]   ;;  %s2678_s9 = inlined_call_operand.hbm [shape: f32[2,8,256], index: 9, kind: output, shape index: {}]  }
   0x1   :  { %15 = vsyncpa [#allocation4], 0 }
   0x2   :  { %17 = vsyncpa [#allocation4 + $0x1], 0  ;;  %s1846_s30 = smov 0   ;;  %s1848_s10 = smov 0  }
   0x3   :  { %s1850_s11 = smov 0   ;;  %s1852_s12 = smov 0  }
   0x4 LB: > { %s1867_s13 = sadd.s32 4294967295, %s1775_s12   ;;  %s1553_s14 = sadd.s32 4294967294, %s1775_s12   ;;  %s1775_s12 = sphi %s1852_s12, %s2767_s12   ;;  %s1771_s11 = sphi %s1850_s11, %s2766_s11   ;;  %s1767_s10 = sphi %s1848_s10, %s2765_s10   ;;  %s1763_s30 = sphi %s1846_s30, %s2764_s30  }
   0x5   : > { %s1871_s15 = sadd.s32 1, %s1775_s12   ;;  %s229_s16 = sadd.s32 1, %s1771_s11 }
   0x6   : > { %s226_s17 = ssub.s32 %s1775_s12, %s1871_s15  ;;  %p239_p0 = scmp.ne.s32.totalorder %s1771_s11, %s1767_s10 }
   0x7   : > { %p227_p1 = scmp.eq.s32.totalorder %s226_s17, 0  ;;  %p240_p2 = scmp.eq.s32.totalorder %s1867_s13, 1 }
   0x8   : > { %p245_p3 = scmp.ne.s32.totalorder %s1767_s10, %s1763_s30  ;;  %p246_p4 = scmp.eq.s32.totalorder %s1553_s14, 1 }
   0x9   : > { %s1882_s18 = scalar_select %p227_p1, %s1771_s11, %s229_s16  }
   0xa   : > { %p1884_p5 = por %p240_p2, %p239_p0  ;;  %p1888_p6 = por %p246_p4, %p245_p3 }
   0xb   : > { %p1554_p7 = scmp.ge.s32.totalorder %s1775_s12, 1  ;;  %p253_p8 = scmp.lt.s32.totalorder %s1775_s12, 3 }
   0xc   : > { %s2715_s19 = scalar_select %p1884_p5, 1, 0 }
   0xd   : > { %s2716_s20 = scalar_select %p1888_p6, 1, 0 }
   0xe   : > { %p2679_p9 = scmp.eq.s32.totalorder %s1867_s13, 0  ;;  %p1895_p10 = pnand %p1554_p7, %p253_p8 }
   0xf   : > { %s1777_s22 = smov [#allocation2]   ;;  %s1681_s27 = scalar_lea.hbm %s2671_s2, 1024 }
  0x10   : > { %s2717_s21 = scalar_select %p1895_p10, 1, 0 }
  0x11   : > { %s265_s23 = sshll.u32 %s1777_s22, 4  ;;  %p1596_p11 = pneg %p1895_p10  ;;  %s266_s23 = int_to_ptr.vmem [resolvable:$true] %s265_s23 }
  0x12   : > { %p1682_p13 = scmp.ne.s32.totalorder %s2671_s2, %s1681_s27  ;;  %p1688_p3 = scmp.lt.u32.totalorder %s1681_s27, %s2671_s2 }
  0x13   : > { %p1903_p12 = pnand %p2679_p9, %p1596_p11 }
  0x15   : > { %p1683_p0 = pneg %p1903_p12 }
  0x17   : > { %p1684_p1 = pnand %p1683_p0, %p1682_p13 }
  0x19   : > { %p1685_p2 = pneg %p1684_p1 }
  0x1b   : > { %p1690_p4 = pnand %p1688_p3, %p1685_p2 }
  0x1d   : > { %1693 = shalt.err (!%p1690_p4)
}
  0x1e   : > { %s1694_s17 = scalar_lea.vmem %s266_s23, 1024  ;;  %p1702_p9 = scmp.lt.s32.totalorder %s266_s23, %s266_s23 }
  0x1f   : > { %p1695_p7 = scmp.ne.s32.totalorder %s266_s23, %s1694_s17  ;;  %p1703_p6 = scmp.lt.s32.totalorder %s1694_s17, %s1694_s17 }
  0x21   : > { %p1697_p8 = pnand %p1695_p7, %p1683_p0  ;;  %p1704_p5 = por %p1703_p6, %p1702_p9 }
  0x23   : > { %p1698_p11 = pneg %p1697_p8 }
  0x25   : > { %p1705_p10 = pnand %p1704_p5, %p1698_p11 }
  0x27   : > { %1708 = shalt.err (!%p1705_p10)
}
  0x28   : > { %s1778_s22 = smov 128   ;;  %s1779_s25 = smov 8  }
  0x29   : > { %1599 = dma.hbm_to_vmem [thread:$0]  (!%p1903_p12), %s2671_s2, 1024, %s266_s23, [#allocation3], %s1778_s22, %s1778_s22, %s1779_s25  }
  0x2a   : > { %p2719_p13 = scmp.ne.s32.totalorder %s2717_s21, 0 }
  0x2b   : > { %p2720_p1 = scmp.eq.s32.totalorder (!%p2719_p13), %s1867_s13, 0 }
  0x2c   : > { %315 = sbr.rel (%p2719_p13) target bundleno = 1387 (0x56b), region = 56 }
  0x33   : > { %1754 = dma.done.wait (%p2720_p1), [#allocation3], 1024   ;;  %p2721_p0 = pmov %p2720_p1 }
  0x34   : > { %p356_p5 = scmp.lt.s32.totalorder %s1867_s13, 1  ;;  %v494_v0 = vlaneseq  ;;  %v2685_v1 = vmov 0   ;;  %v1664_v7 = vld [vmem:[#allocation2 + $0x4] ss:$8 sps:$4 sm:$0xff]   ;;  %v1666_v8 = vld [vmem:[#allocation2] ss:$8 sps:$4 sm:$0xff]  }
  0x35   : > { %1756 = vsyncadd (%p2721_p0), [#allocation3], 4294966272  ;;  %461 = vmatprep.mubr.bf16.mxu0 %v2685_v1  ;;  %1662 = vset.pattern.permute.xlu0 %v2685_v1  ;;  %v1667_v9 = vld [vmem:[#allocation2 + $0x14] ss:$8 sps:$4 sm:$0xff]   ;;  %v1669_v11 = vld [vmem:[#allocation2 + $0x10] ss:$8 sps:$4 sm:$0xff]  }
  0x36   : > { %v495_v2 = vand.u32 127, %v494_v0  ;;  %1663 = vset.pattern.permute.xlu1 %v2685_v1  ;;  %s1934_s21 = scalar_select %p356_p5, %s1867_s13, 1  ;;  %v566_v4 = vshrl.u32 %v494_v0, 7  ;;  %429 = vmatprep.subr.bf16.mxu0 %v1664_v7  ;;  %v1670_v13 = vld [vmem:[#allocation2 + $0x24] ss:$8 sps:$4 sm:$0xff]   ;;  %vm425_vm6 = vcmask 523264  }
  0x37   : > { %430 = vmatpush1.bf16.msra.mxu0 %v1666_v8  ;;  %v1672_v14 = vld [vmem:[#allocation2 + $0x20] ss:$8 sps:$4 sm:$0xff]   ;;  %v1673_v16 = vld [vmem:[#allocation2 + $0x34] ss:$8 sps:$4 sm:$0xff]   ;;  %s1781_s14 = smov 2   ;;  %s1782_s16 = smov 16  }
  0x38   : > { %v496_v3 = vadd.s32 128, %v495_v2  ;;  %v501_v5 = vand.u32 15, %v495_v2  ;;  %s1587_s23 = sshll.u32 %s1934_s21, 3  ;;  %v571_v10 = vsub.s32 4, %v566_v4  ;;  %v567_v12 = vsub.s32 0, %v566_v4  ;;  %431 = vmatprep.subr.bf16.mxu0 %v1667_v9  ;;  %s1783_s17 = smov 18  }
  0x39   : > { %s360_s29 = scalar_lea.vmem %s2669_s0, %s1587_s23  ;;  %v1675_v22 = vld [vmem:[#allocation2 + $0x30] ss:$8 sps:$4 sm:$0xff]   ;;  %s1784_s22 = smov 32   ;;  %vm484_vm7 = vcmask 1043456   ;;  %vm540_vm8 = vcmask 138240   ;;  %vm597_vm9 = vcmask 15360  }
  0x3a   : > { %v508_v6 = vand.u32 15, %v496_v3  ;;  %vm523_vm0 = vcmp.le.s32.totalorder %v501_v5, 14  ;;  %vm521_vm2 = vcmp.ge.s32.totalorder %v501_v5, 1  ;;  %v1676_v23 = vld [vmem:[%s360_s29] sm:$0xff]   ;;  %s1785_s25 = smov 34   ;;  %s365_s24 = scalar_lea.vmem %s2670_s1, %s1587_s23  ;;  %vm865_vm14 = vcmask 1041408  }
  0x3b   : > { %432 = vmatpush1.bf16.msra.mxu0 %v1669_v11  ;;  %v472_v25 = vld [vmem:[%s365_s24] sm:$0xff]  ;;  %s1786_s21 = smov 17   ;;  %s1787_s23 = smov 111   ;;  %vm642_vm15 = vcmask 261120  }
  0x3c   : > { %vm524_vm1 = vcmp.le.s32.totalorder %v508_v6, 14  ;;  %vm522_vm3 = vcmp.ge.s32.totalorder %v508_v6, 1  ;;  %433 = vmatprep.subr.bf16.mxu0 %v1670_v13  ;;  %v1574_v30 = vcombine.low %v472_v25, %v472_v25  ;;  %v1575_v36 = vcombine.high %v472_v25, %v472_v25  ;;  %s1788_s27 = smov 126   ;;  %s1789_s29 = smov 96  }
  0x3d   : > { %vm583_vm4 = vmpackc.low %vm524_vm1, %vm523_vm0  ;;  %vm751_vm1 = vcmask 1040384   ;;  %s1589_s24 = sshll.u32 %s1867_s13, 8  ;;  %p2762_p9 = scmp.ne.s32.totalorder %s2715_s19, 0 }
  0x3e   : > { %v584_v15 = vsel %vm583_vm4, 65537, %v2685_v1  ;;  %vm563_vm5 = vmpackc.low %vm522_vm3, %vm521_vm2  ;;  %s1795_s13 = smov [#allocation5]  }
  0x3f   : > { %v592_v17 = vrot.slane %v584_v15, %v571_v10  ;;  %v588_v18 = vrot.slane %v584_v15, %v567_v12  ;;  %v564_v19 = vsel %vm563_vm5, 65537, %v2685_v1  ;;  %434 = vmatpush1.bf16.msra.mxu0 %v1672_v14  ;;  %vm981_vm5 = vcmask 1042432  }
  0x40   : > { %v1944_v20 = vrot.slane %v564_v19, %v571_v10  ;;  %v1946_v21 = vrot.slane %v564_v19, %v567_v12  ;;  %435 = vmatprep.subr.bf16.mxu0 %v1673_v16 }
  0x41   : > { %595 = vrot.lane.b32.xlu1 %v592_v17, %s1781_s14  ;;  %593 = vrot.lane.b32.xlu0 %v588_v18, %s1781_s14  ;;  %s1790_s14 = smov 95  }
  0x42   : > { %vm574_vm11 = vcmp.ne.s16.totalorder %v1944_v20, 0  ;;  %vm2714_vm12 = vcmp.ne.s16.totalorder %v1946_v21, 0 }
  0x43   : > { %436 = vmatpush1.bf16.msra.mxu0 %v1675_v22 }
  0x45   : > { %610 = vrot.lane.b32.xlu1 %v1944_v20, %s1782_s16  ;;  %608 = vrot.lane.b32.xlu0 %v1946_v21, %s1782_s16  ;;  %s1791_s16 = smov 127  }
  0x46   : > { %1573 = vmatmul.mubr.msk.bf16.vlgmr.msra.gmra.mrb[0].mxu0 %vm425_vm6, %v1676_v23  ;;  %vm612_vm6 = vcmask 130048  }
  0x47   : > { %1426 = vmatprep.mubr.bf16.mxu0 %v2685_v1 }
  0x49   : > { %625 = vrot.lane.b32.xlu1 %v592_v17, %s1783_s17  ;;  %623 = vrot.lane.b32.xlu0 %v588_v18, %s1783_s17  ;;  %s2707_s17 = smov 110  }
  0x4d   : > { %640 = vrot.lane.b32.xlu1 %v1944_v20, %s1784_s22  ;;  %638 = vrot.lane.b32.xlu0 %v1946_v21, %s1784_s22  ;;  %s1793_s22 = smov 112  }
  0x51   : > { %655 = vrot.lane.b32.xlu1 %v592_v17, %s1785_s25  ;;  %653 = vrot.lane.b32.xlu0 %v588_v18, %s1785_s25  ;;  %s1794_s25 = smov 94  }
  0xb3   : > { %v1966_v39 = vpop.permute.xlu0 %593  ;;  %v1968_v40 = vpop.permute.xlu1 %595 }
  0xb4   : > { %vm2712_vm10 = vcmp.ne.s16.totalorder %v1966_v39, 0  ;;  %v1996_v54 = vsel %vm597_vm9, %v1966_v39, %v1968_v40  ;;  %vm2711_vm2 = vcmp.ne.s16.totalorder %v1968_v40, 0  ;;  %vm657_vm9 = vcmask 277504  }
  0xb5   : > { %vm2709_vm13 = vcmp.ne.s16.totalorder %v1996_v54, 0 }
  0xb7   : > { %v1970_v41 = vpop.permute.xlu0 %608  ;;  %v1972_v42 = vpop.permute.xlu1 %610 }
  0xbb   : > { %v1974_v43 = vpop.permute.xlu0 %623  ;;  %v1976_v44 = vpop.permute.xlu1 %625 }
  0xbf   : > { %v1978_v45 = vpop.permute.xlu0 %638  ;;  %v1980_v46 = vpop.permute.xlu1 %640 }
  0xc0   : > { %vm2682_vm0 = vcmp.ne.s16.totalorder %v1978_v45, 0  ;;  %v2042_v9 = vsel %vm642_vm15, %v1978_v45, %v1980_v46  ;;  %vm2684_vm4 = vcmp.ne.s16.totalorder %v1980_v46, 0  ;;  %vm2706_vm15 = vcmp.ne.s16.totalorder %v1970_v41, 0 }
  0xc1   : > { %vm2683_vm3 = vcmp.ne.s16.totalorder %v2042_v9, 0 }
  0xc3   : > { %v1982_v47 = vpop.permute.xlu0 %653  ;;  %v1984_v48 = vpop.permute.xlu1 %655 }
 0x119   : > { %v463_v24 = vpop.f32.mrb[0].mxu0 }
 0x11a   : > { %v465_v26 = vpop.f32.mrb[1].mxu0 }
 0x11b   : > { %v467_v27 = vpop.f32.mrb[2].mxu0 }
 0x11c   : > { %v473_v28 = vpack.c.bf16 %v467_v27, %v463_v24  ;;  %v469_v29 = vpop.f32.mrb[3].mxu0 }
 0x11d   : > { %v474_v31 = vpack.c.bf16 %v469_v29, %v465_v26 }
 0x11e   : > { %v482_v32 = vrot.slane %v473_v28, 4 }
 0x11f   : > { %v483_v33 = vrot.slane %v474_v31, 4 }
 0x120   : > { %v492_v34 = vsel %vm484_vm7, %v482_v32, 1065369472  ;;  %v487_v35 = vsel %vm484_vm7, %v1574_v30, %v482_v32 }
 0x121   : > { %536 = vrot.lane.b32.xlu1 %v492_v34, %s1786_s21  ;;  %532 = vrot.lane.b32.xlu0 %v487_v35, %s1786_s21  ;;  %v493_v37 = vsel %vm484_vm7, %v483_v33, 1065369472  ;;  %v490_v38 = vsel %vm484_vm7, %v1575_v36, %v483_v33 }
 0x125   : > { %538 = vrot.lane.b32.xlu1 %v493_v37, %s1786_s21  ;;  %534 = vrot.lane.b32.xlu0 %v490_v38, %s1786_s21 }
 0x193   : > { %v533_v49 = vpop.permute.xlu0 %532  ;;  %v537_v51 = vpop.permute.xlu1 %536 }
 0x194   : > { %v1988_v50 = vsel %vm540_vm8, 0, %v533_v49  ;;  %v2002_v57 = vsel %vm540_vm8, 0, %v537_v51 }
 0x195   : > { %v866_v52 = vrot.slane %v1988_v50, 6  ;;  %v602_v53 = vsel %vm2712_vm10, %v1988_v50, 0  ;;  %v575_v60 = vsel %vm2714_vm12, %v1988_v50, 0  ;;  %v869_v0 = vrot.slane %v2002_v57, 6 }
 0x196   : > { %v752_v55 = vrot.slane %v602_v53, 7  ;;  %v605_v2 = vsel %vm2712_vm10, %v2002_v57, 0  ;;  %v647_v8 = vsel %vm2682_vm0, %v1988_v50, 0  ;;  %v650_v27 = vsel %vm2682_vm0, %v2002_v57, 0 }
 0x197   : > { %875 = vrot.lane.b32.xlu0 %v866_v52, %s1787_s23  ;;  %v535_v56 = vpop.permute.xlu0 %534  ;;  %v539_v3 = vpop.permute.xlu1 %538  ;;  %v755_v5 = vrot.slane %v605_v2, 7  ;;  %v870_v7 = vsel %vm865_vm14, %v866_v52, %v869_v0  ;;  %v982_v11 = vrot.slane %v647_v8, 5  ;;  %v985_v33 = vrot.slane %v650_v27, 5 }
 0x198   : > { %v2005_v58 = vsel %vm540_vm8, %v533_v49, %v535_v56  ;;  %v2008_v59 = vsel %vm540_vm8, %v535_v56, 0  ;;  %761 = vrot.lane.b32.xlu1 %v752_v55, %s1788_s27  ;;  %v2031_v6 = vsel %vm540_vm8, %v539_v3, 0  ;;  %v2051_v14 = vsel %vm540_vm8, %v537_v51, %v539_v3 }
 0x199   : > { %1578 = vmatprep.subr.msk.bf16.mxu1 %vm574_vm11, %v2005_v58  ;;  %v868_v61 = vrot.slane %v2008_v59, 6  ;;  %v867_v62 = vrot.slane %v2005_v58, 6  ;;  %v603_v63 = vsel %vm2709_vm13, %v2005_v58, 0  ;;  %v756_v10 = vsel %vm751_vm1, %v752_v55, %v755_v5 }
 0x19a   : > { %1168 = vmatpush1.bf16.msra.mxu1 %v575_v60  ;;  %v753_v4 = vrot.slane %v603_v63, 7  ;;  %v873_v12 = vrot.slane %v2031_v6, 6  ;;  %v604_v13 = vsel %vm2711_vm2, %v2008_v59, 0  ;;  %v648_v17 = vsel %vm2683_vm3, %v2005_v58, 0 }
 0x19b   : > { %879 = vrot.lane.b32.xlu0 %v868_v61, %s1787_s23  ;;  %v754_v16 = vrot.slane %v604_v13, 7  ;;  %v871_v18 = vrot.slane %v2051_v14, 6  ;;  %v606_v19 = vsel %vm2709_vm13, %v2051_v14, 0  ;;  %v983_v22 = vrot.slane %v648_v17, 5 }
 0x19c   : > { %877 = vrot.lane.b32.xlu1 %v867_v62, %s1787_s23  ;;  %v874_v15 = vsel %vm865_vm14, %v868_v61, %v873_v12  ;;  %v757_v23 = vrot.slane %v606_v19, 7  ;;  %v649_v25 = vsel %vm2684_vm4, %v2008_v59, 0  ;;  %v651_v26 = vsel %vm2683_vm3, %v2051_v14, 0 }
 0x19d   : > { %v872_v24 = vsel %vm865_vm14, %v867_v62, %v871_v18  ;;  %v680_v28 = vshll.u32 %v2005_v58, 16  ;;  %v687_v29 = vshll.u32 %v2008_v59, 16  ;;  %v984_v31 = vrot.slane %v649_v25, 5 }
 0x19e   : > { %v758_v30 = vsel %vm751_vm1, %v753_v4, %v757_v23  ;;  %v987_v32 = vrot.slane %v651_v26, 5  ;;  %v607_v34 = vsel %vm2711_vm2, %v2031_v6, 0  ;;  %v2703_v35 = vshrl.u32 %v1988_v50, 16 }
 0x19f   : > { %763 = vrot.lane.b32.xlu0 %v753_v4, %s1788_s27  ;;  %v672_v36 = vshll.u32 %v1988_v50, 16  ;;  %v2088_v37 = vrot.slane %v680_v28, 1  ;;  %v2090_v38 = vrot.slane %v687_v29, 1  ;;  %v986_v51 = vsel %vm981_vm5, %v982_v11, %v985_v33 }
 0x1a0   : > { %881 = vrot.lane.b32.xlu1 %v870_v7, %s1787_s23  ;;  %v988_v49 = vsel %vm981_vm5, %v983_v22, %v987_v32  ;;  %v759_v52 = vrot.slane %v607_v34, 7  ;;  %v671_v53 = vrot.slane %v2703_v35, 3  ;;  %v652_v56 = vsel %vm2684_vm4, %v2031_v6, 0 }
 0x1a1   : > { %v674_v55 = vrot.slane %v672_v36, 4  ;;  %v2686_v60 = vshrl.u32 %v2002_v57, 16  ;;  %v1657_v61 = vpack.i.bf16 %v2090_v38, %v2088_v37  ;;  %v2700_v62 = vshll.u32 %v2002_v57, 16 }
 0x1a2   : > { %v684_v63 = vshrl.u32 %v2008_v59, 16  ;;  %v677_v0 = vshrl.u32 %v2005_v58, 16  ;;  %v2111_v2 = vsel %vm612_vm6, %v1970_v41, %v1972_v42  ;;  %v760_v3 = vsel %vm751_vm1, %v754_v16, %v759_v52 }
 0x1a3   : > { %767 = vrot.lane.b32.xlu0 %v756_v10, %s1788_s27  ;;  %v989_v4 = vrot.slane %v652_v56, 5  ;;  %v2118_v5 = vsel %vm657_vm9, %v1982_v47, %v1984_v48  ;;  %v675_v7 = vor.u32 %v674_v55, %v671_v53  ;;  %v693_v8 = vrot.slane %v2686_v60, 3 }
 0x1a4   : > { %991 = vrot.lane.b32.xlu1 %v982_v11, %s1789_s29  ;;  %v696_v10 = vrot.slane %v2700_v62, 4  ;;  %v686_v11 = vrot.slane %v684_v63, 3  ;;  %v689_v12 = vrot.slane %v687_v29, 4  ;;  %v682_v13 = vrot.slane %v680_v28, 4 }
 0x1a5   : > { %v703_v17 = vshll.u32 %v2051_v14, 16  ;;  %v2687_v18 = vshrl.u32 %v2031_v6, 16  ;;  %vm2705_vm6 = vcmp.ne.s16.totalorder %v1974_v43, 0  ;;  %vm2691_vm9 = vcmp.ne.s16.totalorder %v1984_v48, 0 }
 0x1a6   : > { %v990_v19 = vsel %vm981_vm5, %v984_v31, %v989_v4  ;;  %vm2693_vm0 = vcmp.ne.s16.totalorder %v1982_v47, 0  ;;  %vm2690_vm3 = vcmp.ne.s16.totalorder %v2118_v5, 0  ;;  %vm668_vm4 = vsmask.f32 4352 }
 0x1a7   : > { %885 = vrot.lane.b32.xlu0 %v874_v15, %s1787_s23  ;;  %v679_v15 = vrot.slane %v677_v0, 3  ;;  %v632_v23 = vsel %vm2705_vm6, %v1988_v50, 0  ;;  %v2143_v25 = vor.u32 %v689_v12, %v686_v11  ;;  %v617_v26 = vsel %vm2706_vm15, %v1988_v50, 0 }
 0x1a8   : > { %765 = vrot.lane.b32.xlu1 %v754_v16, %s1788_s27  ;;  %v2688_v16 = vshrl.u32 %v2051_v14, 16  ;;  %v2151_v27 = vsel %vm2690_vm3, %v2005_v58, 0  ;;  %v896_v33 = vshrl.u32 %v632_v23, 16  ;;  %v899_v34 = vshll.u32 %v632_v23, 16 }
 0x1a9   : > { %v2153_v28 = vor.u32 %v682_v13, %v679_v15  ;;  %v2170_v52 = vsel %vm2691_vm9, %v2008_v59, 0  ;;  %v2175_v53 = vsel %vm2693_vm0, %v1988_v50, 0  ;;  %v2180_v55 = vsel %vm2690_vm3, %v2051_v14, 0 }
 0x1aa   : > { %v702_v29 = vrot.slane %v2688_v16, 3  ;;  %v2697_v56 = vrot.slane %v2170_v52, 4  ;;  %v2188_v4 = vsel %vm2691_vm9, %v2031_v6, 0  ;;  %v2197_v12 = vsel %vm2693_vm0, %v2002_v57, 0 }
 0x1ab   : > { %993 = vrot.lane.b32.xlu0 %v983_v22, %s1789_s29  ;;  %v2702_v22 = vshll.u32 %v2031_v6, 16  ;;  %v2694_v11 = vrot.slane %v2188_v4, 4  ;;  %v620_v15 = vsel %vm2706_vm15, %v2002_v57, 0  ;;  %v2692_v23 = vrot.slane %v2197_v12, 4 }
 0x1ac   : > { %883 = vrot.lane.b32.xlu1 %v872_v24, %s1787_s23  ;;  %v697_v24 = vor.u32 %v696_v10, %v693_v8  ;;  %v785_v8 = vshll.u32 %v617_v26, 16  ;;  %v635_v10 = vsel %vm2705_vm6, %v2002_v57, 0  ;;  %v898_v60 = vrot.slane %v896_v33, 1 }
 0x1ad   : > { %v713_v32 = vrot.slane %v2702_v22, 4  ;;  %v923_v16 = vshll.u32 %v635_v10, 16  ;;  %vm2699_vm3 = vcmp.ne.s16.totalorder %v1972_v42, 0  ;;  %vm2695_vm9 = vcmp.ne.s16.totalorder %v2111_v2, 0 }
 0x1ae   : > { %v698_v13 = vsel %vm668_vm4, %v675_v7, %v697_v24  ;;  %vm627_vm0 = vcmask 146432   ;;  %vm1155_vm6 = vcmask 793600   ;;  %vm2710_vm15 = vcmask 908288  }
 0x1af   : > { %769 = vrot.lane.b32.xlu0 %v758_v30, %s1788_s27  ;;  %v705_v30 = vrot.slane %v703_v17, 4  ;;  %vm1137_vm13 = vcmask 1047552   ;;  %vm1098_vm10 = vcmask 1044480  }
 0x1b0   : > { %995 = vrot.lane.b32.xlu1 %v984_v31, %s1789_s29  ;;  %v710_v31 = vrot.slane %v2687_v18, 3  ;;  %v920_v18 = vshrl.u32 %v635_v10, 16  ;;  %v925_v10 = vrot.slane %v923_v16, 2 }
 0x1b2   : > { %v714_v1 = vor.u32 %v713_v32, %v710_v31  ;;  %v806_v31 = vshrl.u32 %v620_v15, 16  ;;  %v809_v32 = vshll.u32 %v620_v15, 16  ;;  %v619_v15 = vsel %vm2699_vm3, %v2008_v59, 0 }
 0x1b3   : > { %999 = vrot.lane.b32.xlu0 %v988_v49, %s1789_s29  ;;  %v2698_v49 = vrot.slane %v2151_v27, 4 }
 0x1b4   : > { %997 = vrot.lane.b32.xlu1 %v986_v51, %s1789_s29  ;;  %v782_v51 = vshrl.u32 %v617_v26, 16  ;;  %v706_v26 = vor.u32 %v705_v30, %v702_v29  ;;  %v787_v30 = vrot.slane %v785_v8, 3  ;;  %v808_v8 = vrot.slane %v806_v31, 2 }
 0x1b5   : > { %v621_v31 = vsel %vm2695_vm9, %v2051_v14, 0 }
 0x1b6   : > { %v784_v29 = vrot.slane %v782_v51, 2 }
 0x1b7   : > { %1658 = vrot.lane.b32.xlu0 %v1657_v61, %s1790_s14  ;;  %v2696_v61 = vrot.slane %v2175_v53, 4 }
 0x1b8   : > { %771 = vrot.lane.b32.xlu1 %v760_v3, %s1788_s27  ;;  %v2689_v3 = vrot.slane %v2180_v55, 4  ;;  %v788_v51 = vor.u32 %v787_v30, %v784_v29  ;;  %v801_v29 = vshll.u32 %v619_v15, 16 }
 0x1bb   : > { %716 = vrot.lane.b32.xlu0 %v675_v7, %s1791_s16  ;;  %v2219_v7 = vsel %vm484_vm7, %v2697_v56, %v2694_v11  ;;  %v707_v56 = vsel %vm668_vm4, %v2153_v28, %v706_v26 }
 0x1bc   : > { %1001 = vrot.lane.b32.xlu1 %v990_v19, %s1789_s29  ;;  %v2210_v19 = vsel %vm484_vm7, %v2698_v49, %v2689_v3  ;;  %v2226_v3 = vsel %vm484_vm7, %v2696_v61, %v2692_v23  ;;  %v811_v23 = vrot.slane %v809_v32, 3  ;;  %v2250_v32 = vsel %vm627_vm0, %v1974_v43, %v1976_v44 }
 0x1bd   : > { %v818_v61 = vshll.u32 %v621_v31, 16  ;;  %vm2704_vm0 = vcmp.ne.s16.totalorder %v1976_v44, 0 }
 0x1be   : > { %v812_v30 = vor.u32 %v811_v23, %v808_v8  ;;  %v815_v8 = vshrl.u32 %v621_v31, 16 }
 0x1bf   : > { %728 = vrot.lane.b32.xlu0 %v697_v24, %s1791_s16  ;;  %v901_v24 = vrot.slane %v899_v34, 2  ;;  %v922_v34 = vrot.slane %v920_v18, 1 }
 0x1c0   : > { %720 = vrot.lane.b32.xlu1 %v2143_v25, %s1791_s16 }
 0x1c1   : > { %v2232_v33 = vor.u32 %v901_v24, %v898_v60  ;;  %v2243_v16 = vor.u32 %v925_v10, %v922_v34  ;;  %v798_v24 = vshrl.u32 %v619_v15, 16  ;;  %v622_v34 = vsel %vm2699_vm3, %v2031_v6, 0 }
 0x1c2   : > { %v715_v15 = vsel %vm668_vm4, %v2143_v25, %v714_v1  ;;  %vm780_vm3 = vsmask.f32 5376  ;;  %v820_v25 = vrot.slane %v818_v61, 3 }
 0x1c3   : > { %718 = vrot.lane.b32.xlu0 %v2153_v28, %s1791_s16  ;;  %v800_v23 = vrot.slane %v798_v24, 2  ;;  %v827_v24 = vshll.u32 %v622_v34, 16  ;;  %v634_v28 = vsel %vm2704_vm0, %v2008_v59, 0 }
 0x1c4   : > { %722 = vrot.lane.b32.xlu1 %v698_v13, %s1791_s16  ;;  %v618_v13 = vsel %vm2695_vm9, %v2005_v58, 0  ;;  %vm2701_vm9 = vcmp.ne.s16.totalorder %v2250_v32, 0 }
 0x1c5   : > { %v790_v60 = vshrl.u32 %v618_v13, 16  ;;  %v793_v18 = vshll.u32 %v618_v13, 16  ;;  %v803_v13 = vrot.slane %v801_v29, 3  ;;  %v829_v62 = vrot.slane %v827_v24, 3 }
 0x1c6   : > { %v636_v61 = vsel %vm2701_vm9, %v2051_v14, 0 }
 0x1c7   : > { %730 = vrot.lane.b32.xlu0 %v706_v26, %s1791_s16  ;;  %v792_v11 = vrot.slane %v790_v60, 2  ;;  %v795_v10 = vrot.slane %v793_v18, 3  ;;  %v633_v60 = vsel %vm2701_vm9, %v2005_v58, 0  ;;  %v824_v18 = vshrl.u32 %v622_v34, 16 }
 0x1c8   : > { %732 = vrot.lane.b32.xlu1 %v714_v1, %s1791_s16  ;;  %v804_v49 = vor.u32 %v803_v13, %v800_v23  ;;  %v817_v1 = vrot.slane %v815_v8, 2  ;;  %v904_v31 = vshrl.u32 %v633_v60, 16  ;;  %v912_v34 = vshrl.u32 %v634_v28, 16 }
 0x1c9   : > { %v796_v29 = vor.u32 %v795_v10, %v792_v11  ;;  %v826_v26 = vrot.slane %v824_v18, 2  ;;  %v915_v11 = vshll.u32 %v634_v28, 16  ;;  %v637_v8 = vsel %vm2704_vm0, %v2031_v6, 0 }
 0x1ca   : > { %v821_v10 = vor.u32 %v820_v25, %v817_v1  ;;  %v906_v23 = vrot.slane %v904_v31, 1  ;;  %v914_v18 = vrot.slane %v912_v34, 1  ;;  %v932_v24 = vshll.u32 %v636_v61, 16 }
 0x1cb   : > { %946 = vrot.lane.b32.xlu0 %v2232_v33, %s2707_s17  ;;  %v938_v25 = vshrl.u32 %v637_v8, 16  ;;  %v941_v31 = vshll.u32 %v637_v8, 16  ;;  %vm894_vm9 = vsmask.f32 6400  ;;  %vm1010_vm0 = vsmask.f32 7424 }
 0x1cc   : > { %832 = vrot.lane.b32.xlu1 %v788_v51, %s1793_s22  ;;  %v2723_v58 = vshll.u32 %v2031_v6, 16  ;;  %vm2403_vm2 = vmand %vm1137_vm13, %vm1010_vm0  ;;  %vm734_vm13 = vcmask 1039360  }
 0x1cd   : > { %v940_v22 = vrot.slane %v938_v25, 1  ;;  %v943_v35 = vrot.slane %v941_v31, 2 }
 0x1cf   : > { %958 = vrot.lane.b32.xlu0 %v2243_v16, %s2707_s17  ;;  %v944_v34 = vor.u32 %v943_v35, %v940_v22  ;;  %v1018_v35 = vrot.slane %v703_v17, 1  ;;  %v1020_v22 = vor.u32 %v2090_v38, %v684_v63  ;;  %v2725_v63 = vshrl.u32 %v2051_v14, 16 }
 0x1d0   : > { %844 = vrot.lane.b32.xlu1 %v812_v30, %s1793_s22 }
 0x1d3   : > { %726 = vrot.lane.b32.xlu0 %v715_v15, %s1791_s16  ;;  %v907_v15 = vshll.u32 %v633_v60, 16  ;;  %v830_v60 = vor.u32 %v829_v62, %v826_v26  ;;  %v927_v62 = vsel %vm894_vm9, %v2232_v33, %v2243_v16  ;;  %v1017_v33 = vor.u32 %v2088_v37, %v677_v0 }
 0x1d4   : > { %724 = vrot.lane.b32.xlu1 %v707_v56, %s1791_s16  ;;  %v813_v56 = vsel %vm780_vm3, %v788_v51, %v812_v30  ;;  %v917_v51 = vrot.slane %v915_v11, 2  ;;  %v929_v30 = vshrl.u32 %v636_v61, 16  ;;  %v822_v11 = vsel %vm780_vm3, %v796_v29, %v821_v10 }
 0x1d5   : > { %v909_v13 = vrot.slane %v907_v15, 2  ;;  %v2722_v16 = vshrl.u32 %v1988_v50, 16  ;;  %v1021_v37 = vrot.slane %v2723_v58, 1  ;;  %v2724_v0 = vshll.u32 %v2002_v57, 16 }
 0x1d6   : > { %v918_v15 = vor.u32 %v917_v51, %v914_v18  ;;  %v931_v28 = vrot.slane %v929_v30, 1  ;;  %v2726_v61 = vshrl.u32 %v2031_v6, 16  ;;  %v2728_v18 = vrot.slane %v2170_v52, 4 }
 0x1d7   : > { %834 = vrot.lane.b32.xlu0 %v796_v29, %s1793_s22  ;;  %v910_v1 = vor.u32 %v909_v13, %v906_v23  ;;  %v831_v23 = vsel %vm780_vm3, %v804_v49, %v830_v60  ;;  %v1011_v13 = vrot.slane %v672_v36, 1  ;;  %v1019_v36 = vsel %vm1010_vm0, %v1017_v33, %v1018_v35 }
 0x1d8   : > { %836 = vrot.lane.b32.xlu1 %v804_v49, %s1793_s22  ;;  %v1015_v17 = vrot.slane %v2724_v0, 1  ;;  %v1022_v29 = vsel %vm1010_vm0, %v1020_v22, %v1021_v37  ;;  %v945_v50 = vsel %vm894_vm9, %v918_v15, %v944_v34  ;;  %v1025_v8 = vor.u32 %v1021_v37, %v2726_v61 }
 0x1d9   : > { %v1014_v49 = vor.u32 %v1011_v13, %v2722_v16  ;;  %v2729_v51 = vshrl.u32 %v2002_v57, 16  ;;  %v2730_v6 = vrot.slane %v2175_v53, 4  ;;  %v2731_v53 = vrot.slane %v2180_v55, 4  ;;  %v526_v55 = vld [vmem:[%s2673_s4] sm:$0xff] }
 0x1db   : > { %838 = vrot.lane.b32.xlu0 %v813_v56, %s1793_s22  ;;  %v934_v56 = vrot.slane %v932_v24, 2  ;;  %v1016_v59 = vsel %vm1010_vm0, %v1014_v49, %v1015_v17  ;;  %v1023_v30 = vor.u32 %v1015_v17, %v2729_v51  ;;  %v2344_v24 = vld [vmem:[%s2672_s3] sm:$0xff]  ;;  %vm1099_vm0 = vmand %vm1098_vm10, %vm668_vm4  ;;  %vm1111_vm10 = vcmask 1045504  }
 0x1dc   : > { %846 = vrot.lane.b32.xlu1 %v821_v10, %s1793_s22  ;;  %v1024_v10 = vor.u32 %v1018_v35, %v2725_v63  ;;  %vm773_vm4 = vcmask 1031168  }
 0x1dd   : > { %v935_v26 = vor.u32 %v934_v56, %v931_v28  ;;  %v527_v56 = vld [vmem:[%s2674_s5] sm:$0xff] }
 0x1df   : > { %848 = vrot.lane.b32.xlu0 %v830_v60, %s1793_s22  ;;  %v936_v38 = vsel %vm894_vm9, %v910_v1, %v935_v26  ;;  %v2727_v60 = vrot.slane %v2151_v27, 4  ;;  %v1577_v27 = vcombine.high %v2344_v24, %v2344_v24 }
 0x1e0   : > { %948 = vrot.lane.b32.xlu1 %v910_v1, %s2707_s17 }
 0x1e1   : > { %1579 = vmatprep.mubr.msk.bf16.mxu1 %vm1155_vm6, %v1577_v27  ;;  %vm2713_vm6 = vcmask 785408  }
 0x1e3   : > { %950 = vrot.lane.b32.xlu0 %v918_v15, %s2707_s17 }
 0x1e4   : > { %952 = vrot.lane.b32.xlu1 %v927_v62, %s2707_s17 }
 0x1e7   : > { %960 = vrot.lane.b32.xlu0 %v935_v26, %s2707_s17 }
 0x1e8   : > { %962 = vrot.lane.b32.xlu1 %v944_v34, %s2707_s17 }
 0x1eb   : > { %840 = vrot.lane.b32.xlu0 %v822_v11, %s1793_s22 }
 0x1ec   : > { %842 = vrot.lane.b32.xlu1 %v831_v23, %s1793_s22 }
 0x1ef   : > { %1026 = vrot.lane.b32.xlu0 %v1011_v13, %s1790_s14 }
 0x1f0   : > { %1034 = vrot.lane.b32.xlu1 %v1019_v36, %s1790_s14 }
 0x1f3   : > { %1036 = vrot.lane.b32.xlu0 %v1022_v29, %s1790_s14 }
 0x1f4   : > { %1032 = vrot.lane.b32.xlu1 %v1016_v59, %s1790_s14 }
 0x1f7   : > { %956 = vrot.lane.b32.xlu0 %v945_v50, %s2707_s17 }
 0x1f8   : > { %954 = vrot.lane.b32.xlu1 %v936_v38, %s2707_s17 }
 0x1fb   : > { %1040 = vrot.lane.b32.xlu0 %v1024_v10, %s1790_s14 }
 0x1fc   : > { %1042 = vrot.lane.b32.xlu1 %v1025_v8, %s1790_s14 }
 0x1ff   : > { %1073 = vrot.lane.b32.xlu0 %v2727_v60, %s1794_s25 }
 0x200   : > { %1075 = vrot.lane.b32.xlu1 %v2728_v18, %s1794_s25 }
 0x203   : > { %1038 = vrot.lane.b32.xlu0 %v1023_v30, %s1790_s14 }
 0x204   : > { %1071 = vrot.lane.b32.xlu1 %v2730_v6, %s1794_s25 }
 0x207   : > { %1079 = vrot.lane.b32.xlu0 %v2210_v19, %s1794_s25 }
 0x208   : > { %1081 = vrot.lane.b32.xlu1 %v2219_v7, %s1794_s25  ;;  %v2732_v7 = vrot.slane %v2188_v4, 4 }
 0x209   : > { %v876_v52 = vpop.permute.xlu0 %875 }
 0x20a   : > { %v2352_v1 = vpop.permute.xlu1 %761 }
 0x20b   : > { %1077 = vrot.lane.b32.xlu0 %v2226_v3, %s1794_s25  ;;  %v2733_v3 = vrot.slane %v2197_v12, 4 }
 0x20c   : > { %1085 = vrot.lane.b32.xlu1 %v2731_v53, %s1794_s25  ;;  %v577_v53 = vsel %vm2714_vm12, %v2002_v57, 0 }
 0x20d   : > { %v880_v25 = vpop.permute.xlu0 %879 }
 0x20e   : > { %v878_v19 = vpop.permute.xlu1 %877 }
 0x20f   : > { %v2360_v31 = vsel %vm2710_vm15, %v876_v52, %v878_v19  ;;  %v2363_v15 = vsel %vm2710_vm15, %v878_v19, %v880_v25  ;;  %1087 = vrot.lane.b32.xlu0 %v2732_v7, %s1794_s25  ;;  %v578_v52 = vsel %vm574_vm11, %v2051_v14, 0 }
 0x210   : > { %1083 = vrot.lane.b32.xlu1 %v2733_v3, %s1794_s25 }
 0x211   : > { %v2374_v28 = vpop.permute.xlu0 %763 }
 0x212   : > { %v882_v62 = vpop.permute.xlu1 %881 }
 0x213   : > { %1210 = vperm.xlu0 %1662, %v526_v55  }
 0x214   : > { %1217 = vperm.xlu1 %1663, %v527_v56  }
 0x215   : > { %v2379_v26 = vpop.permute.xlu0 %767 }
 0x216   : > { %v992_v4 = vpop.permute.xlu1 %991 }
 0x219   : > { %v886_v34 = vpop.permute.xlu0 %885 }
 0x21a   : > { %v766_v11 = vpop.permute.xlu1 %765 }
 0x21d   : > { %v994_v12 = vpop.permute.xlu0 %993 }
 0x21e   : > { %v2382_v23 = vsel %vm2713_vm6, %v992_v4, %v994_v12  ;;  %v884_v13 = vpop.permute.xlu1 %883 }
 0x21f   : > { %v2385_v33 = vsel %vm2710_vm15, %v882_v62, %v884_v13  ;;  %v2388_v35 = vsel %vm2710_vm15, %v884_v13, %v886_v34  ;;  %vm1044_vm15 = vcmask 777216  }
 0x221   : > { %v2390_v22 = vpop.permute.xlu0 %769 }
 0x222   : > { %v996_v16 = vpop.permute.xlu1 %995 }
 0x223   : > { %v2393_v49 = vsel %vm2713_vm6, %v994_v12, %v996_v16  ;;  %v775_v16 = vsel %vm773_vm4, %v2374_v28, %v766_v11 }
 0x225   : > { %v1000_v36 = vpop.permute.xlu0 %999 }
 0x226   : > { %v998_v58 = vpop.permute.xlu1 %997 }
 0x227   : > { %v2396_v37 = vsel %vm2713_vm6, %v998_v58, %v1000_v36 }
 0x229   : > { %v2398_v0 = vpop.permute.xlu0 %1658 }
 0x22a   : > { %v772_v17 = vpop.permute.xlu1 %771  ;;  %v1661_v29 = vunpack.i.h.bf16 %v2398_v0  ;;  %v1660_v59 = vunpack.i.l.bf16 %v2398_v0 }
 0x22b   : > { %v777_v11 = vsel %vm773_vm4, %v2390_v22, %v772_v17 }
 0x22c   : > { %v2413_v61 = vsel %vm1044_vm15, %v1660_v59, %v1661_v29 }
 0x22d   : > { %v717_v50 = vpop.permute.xlu0 %716 }
 0x22e   : > { %v1002_v63 = vpop.permute.xlu1 %1001 }
 0x22f   : > { %v2408_v10 = vsel %vm2713_vm6, %v1000_v36, %v1002_v63  ;;  %vm2438_vm6 = vmand %vm1111_vm10, %vm780_vm3  ;;  %vm1124_vm3 = vcmask 1046528   ;;  %vm964_vm10 = vcmask 900096  }
 0x230   : > { %v1140_v8 = vsel %vm2403_vm2, %v2408_v10, %v2413_v61  ;;  %vm2458_vm12 = vmand %vm1124_vm3, %vm894_vm9  ;;  %vm2745_vm9 = vcmp.ne.s16.totalorder %v2042_v9, 0  ;;  %vm2748_vm3 = vcmp.ne.s16.totalorder %v2111_v2, 0 }
 0x231   : > { %v729_v60 = vpop.permute.xlu0 %728 }
 0x232   : > { %v721_v18 = vpop.permute.xlu1 %720 }
 0x235   : > { %v719_v51 = vpop.permute.xlu0 %718 }
 0x236   : > { %v735_v30 = vsel %vm734_vm13, %v717_v50, %v719_v51  ;;  %v736_v6 = vsel %vm734_vm13, %v719_v51, %v721_v18  ;;  %v723_v27 = vpop.permute.xlu1 %722  ;;  %v774_v18 = vsel %vm773_vm4, %v2352_v1, %v2374_v28  ;;  %v776_v1 = vsel %vm773_vm4, %v2379_v26, %v2390_v22 }
 0x237   : > { %v1101_v25 = vsel %vm1099_vm0, %v578_v52, %v736_v6  ;;  %v1100_v19 = vsel %vm1099_vm0, %v577_v53, %v735_v30  ;;  %vm850_vm0 = vcmask 916480  }
 0x238   : > { %1169 = vmatprep.subr.bf16.mxu1 %v1101_v25 }
 0x239   : > { %1170 = vmatpush1.bf16.msra.mxu1 %v1100_v19  ;;  %v731_v7 = vpop.permute.xlu0 %730 }
 0x23a   : > { %v733_v3 = vpop.permute.xlu1 %732  ;;  %v739_v36 = vsel %vm734_vm13, %v729_v60, %v731_v7 }
 0x23b   : > { %v740_v12 = vsel %vm734_vm13, %v731_v7, %v733_v3  ;;  %v1105_v51 = vsel %vm751_vm1, %v739_v36, %v774_v18 }
 0x23c   : > { %v1109_v29 = vsel %vm751_vm1, %v740_v12, %v775_v16 }
 0x23d   : > { %v947_v55 = vpop.permute.xlu0 %946 }
 0x23e   : > { %v833_v56 = vpop.permute.xlu1 %832 }
 0x241   : > { %v2428_v62 = vpop.permute.xlu0 %958 }
 0x242   : > { %v845_v4 = vpop.permute.xlu1 %844 }
 0x245   : > { %v727_v34 = vpop.permute.xlu0 %726 }
 0x246   : > { %v725_v13 = vpop.permute.xlu1 %724 }
 0x247   : > { %v738_v14 = vsel %vm734_vm13, %v725_v13, %v727_v34  ;;  %v737_v57 = vsel %vm734_vm13, %v723_v27, %v725_v13 }
 0x248   : > { %1171 = vmatprep.subr.bf16.mxu1 %v738_v14 }
 0x249   : > { %1172 = vmatpush1.bf16.msra.mxu1 %v737_v57  ;;  %v835_v58 = vpop.permute.xlu0 %834 }
 0x24a   : > { %v837_v63 = vpop.permute.xlu1 %836  ;;  %1173 = vmatprep.subr.bf16.mxu1 %v1109_v29  ;;  %v851_v6 = vsel %vm850_vm0, %v833_v56, %v835_v58 }
 0x24b   : > { %v852_v60 = vsel %vm850_vm0, %v835_v58, %v837_v63  ;;  %v1113_v28 = vsel %vm2438_vm6, %v776_v1, %v851_v6 }
 0x24c   : > { %v1114_v30 = vsel %vm2438_vm6, %v777_v11, %v852_v60  ;;  %vm2747_vm6 = vcmp.ne.s16.totalorder %v1974_v43, 0 }
 0x24d   : > { %1174 = vmatpush1.bf16.msra.mxu1 %v1105_v51  ;;  %v839_v27 = vpop.permute.xlu0 %838 }
 0x24e   : > { %v847_v52 = vpop.permute.xlu1 %846  ;;  %1175 = vmatprep.subr.bf16.mxu1 %v1114_v30 }
 0x251   : > { %1176 = vmatpush1.bf16.msra.mxu1 %v1113_v28  ;;  %v849_v17 = vpop.permute.xlu0 %848 }
 0x252   : > { %v949_v25 = vpop.permute.xlu1 %948  ;;  %v856_v14 = vsel %vm850_vm0, %v847_v52, %v849_v17 }
 0x253   : > { %v965_v19 = vsel %vm964_vm10, %v947_v55, %v949_v25  ;;  %v1122_v58 = vsel %vm865_vm14, %v856_v14, %v2363_v15 }
 0x254   : > { %v1126_v7 = vsel %vm2458_vm12, %v2385_v33, %v965_v19  ;;  %v855_v33 = vsel %vm850_vm0, %v845_v4, %v847_v52 }
 0x255   : > { %v951_v3 = vpop.permute.xlu0 %950  ;;  %v1118_v63 = vsel %vm865_vm14, %v855_v33, %v2360_v31  ;;  %vm2741_vm14 = vcmp.ne.s16.totalorder %v1966_v39, 0 }
 0x256   : > { %v966_v26 = vsel %vm964_vm10, %v949_v25, %v951_v3  ;;  %v953_v22 = vpop.permute.xlu1 %952 }
 0x257   : > { %v1127_v56 = vsel %vm2458_vm12, %v2388_v35, %v966_v26  ;;  %vm1089_vm12 = vcmask 769024   ;;  %v2740_v26 = vmov 0  }
 0x259   : > { %v961_v34 = vpop.permute.xlu0 %960 }
 0x25a   : > { %v963_v12 = vpop.permute.xlu1 %962 }
 0x25b   : > { %v970_v15 = vsel %vm964_vm10, %v961_v34, %v963_v12 }
 0x25c   : > { %v1135_v31 = vsel %vm981_vm5, %v970_v15, %v2393_v49 }
 0x25d   : > { %v841_v13 = vpop.permute.xlu0 %840 }
 0x25e   : > { %v843_v57 = vpop.permute.xlu1 %842  ;;  %v853_v16 = vsel %vm850_vm0, %v839_v27, %v841_v13 }
 0x25f   : > { %v854_v55 = vsel %vm850_vm0, %v841_v13, %v843_v57 }
 0x260   : > { %1177 = vmatprep.subr.bf16.mxu1 %v854_v55 }
 0x261   : > { %1178 = vmatpush1.bf16.msra.mxu1 %v853_v16  ;;  %v1027_v36 = vpop.permute.xlu0 %1026  ;;  %v1576_v16 = vcombine.low %v2344_v24, %v2344_v24 }
 0x262   : > { %v1045_v35 = vsel %vm1044_vm15, %v1027_v36, %v1660_v59  ;;  %v1035_v29 = vpop.permute.xlu1 %1034  ;;  %1179 = vmatprep.subr.bf16.mxu1 %v1122_v58 }
 0x263   : > { %v1139_v50 = vsel %vm2403_vm2, %v2396_v37, %v1045_v35  ;;  %v969_v37 = vsel %vm964_vm10, %v2428_v62, %v961_v34  ;;  %vm2743_vm2 = vcmp.ne.s16.totalorder %v1996_v54, 0 }
 0x264   : > { %v1131_v6 = vsel %vm981_vm5, %v969_v37, %v2382_v23  ;;  %vm2744_vm5 = vcmp.ne.s16.totalorder %v1980_v46, 0 }
 0x265   : > { %1180 = vmatpush1.bf16.msra.mxu1 %v1118_v63  ;;  %v1037_v4 = vpop.permute.xlu0 %1036 }
 0x266   : > { %v1033_v18 = vpop.permute.xlu1 %1032  ;;  %1181 = vmatprep.subr.bf16.mxu1 %v1127_v56  ;;  %v1048_v1 = vsel %vm1044_vm15, %v1035_v29, %v1037_v4 }
 0x267   : > { %v1047_v17 = vsel %vm1044_vm15, %v1033_v18, %v1035_v29 }
 0x269   : > { %1182 = vmatpush1.bf16.msra.mxu1 %v1126_v7  ;;  %v957_v11 = vpop.permute.xlu0 %956 }
 0x26a   : > { %v955_v0 = vpop.permute.xlu1 %954 }
 0x26b   : > { %v968_v59 = vsel %vm964_vm10, %v955_v0, %v957_v11  ;;  %v967_v60 = vsel %vm964_vm10, %v953_v22, %v955_v0  ;;  %v1160_v22 = vsel %vm751_vm1, 65535, %v2740_v26  ;;  %vm2742_vm1 = vcmp.ne.s16.totalorder %v1968_v40, 0 }
 0x26c   : > { %1183 = vmatprep.subr.bf16.mxu1 %v968_v59 }
 0x26d   : > { %1184 = vmatpush1.bf16.msra.mxu1 %v967_v60  ;;  %v1041_v51 = vpop.permute.xlu0 %1040 }
 0x26e   : > { %v1043_v30 = vpop.permute.xlu1 %1042  ;;  %1185 = vmatprep.subr.bf16.mxu1 %v1135_v31 }
 0x26f   : > { %v1050_v23 = vsel %vm1044_vm15, %v1041_v51, %v1043_v30 }
 0x271   : > { %1186 = vmatpush1.bf16.msra.mxu1 %v1131_v6  ;;  %v1074_v27 = vpop.permute.xlu0 %1073 }
 0x272   : > { %v1076_v52 = vpop.permute.xlu1 %1075  ;;  %1187 = vmatprep.subr.bf16.mxu1 %v1140_v8 }
 0x273   : > { %v1091_v49 = vsel %vm1089_vm12, %v1074_v27, %v1076_v52 }
 0x274   : > { %v1147_v10 = vsel %vm484_vm7, %v1050_v23, %v1091_v49 }
 0x275   : > { %v1039_v62 = vpop.permute.xlu0 %1038  ;;  %1188 = vmatpush1.bf16.msra.mxu1 %v1139_v50 }
 0x276   : > { %v1072_v28 = vpop.permute.xlu1 %1071  ;;  %1189 = vmatprep.subr.bf16.mxu1 %v1048_v1  ;;  %v1049_v53 = vsel %vm1044_vm15, %v1039_v62, %v1041_v51 }
 0x277   : > { %v1090_v38 = vsel %vm1089_vm12, %v1072_v28, %v1074_v27 }
 0x278   : > { %v1143_v8 = vsel %vm484_vm7, %v1049_v53, %v1090_v38 }
 0x279   : > { %v1080_v25 = vpop.permute.xlu0 %1079  ;;  %1190 = vmatpush1.bf16.msra.mxu1 %v1047_v17 }
 0x27a   : > { %v1082_v61 = vpop.permute.xlu1 %1081  ;;  %1191 = vmatprep.subr.bf16.mxu1 %v1147_v10 }
 0x27b   : > { %v1093_v7 = vsel %vm1089_vm12, %v1080_v25, %v1082_v61 }
 0x27d   : > { %v1078_v19 = vpop.permute.xlu0 %1077  ;;  %1192 = vmatpush1.bf16.msra.mxu1 %v1143_v8  ;;  %v1230_v8 = vld [vmem:[%s2677_s8] sm:$0xff] }
 0x27e   : > { %v1086_v3 = vpop.permute.xlu1 %1085  ;;  %1193 = vmatprep.subr.bf16.mxu1 %v1093_v7  ;;  %v1092_v56 = vsel %vm1089_vm12, %v1078_v19, %v1080_v25 }
 0x281   : > { %v1088_v34 = vpop.permute.xlu0 %1087  ;;  %1194 = vmatpush1.bf16.msra.mxu1 %v1092_v56 }
 0x282   : > { %v1095_v12 = vsel %vm1089_vm12, %v1086_v3, %v1088_v34  ;;  %v1084_v13 = vpop.permute.xlu1 %1083 }
 0x283   : > { %v1165_v14 = vand.u32 %v1160_v22, %v1095_v12  ;;  %v1094_v57 = vsel %vm1089_vm12, %v1084_v13, %v1086_v3 }
 0x284   : > { %v1162_v55 = vand.u32 %v1160_v22, %v1094_v57 }
 0x285   : > { %1195 = vmatprep.subr.bf16.mxu1 %v1165_v14 }
 0x286   : > { %1196 = vmatpush1.bf16.msra.mxu1 %v1162_v55 }
 0x289   : > { %1200 = vmatmul.mubr.bf16.vlgmr.msra.gmra.mrb[0].mxu1 %v1576_v16 }
 0x292   : > { %v1211_v33 = vpop.permute.xlu0 %1210 }
 0x293   : > { %v1218_v58 = vpop.permute.xlu1 %1217 }
 0x35c   : > { %v1201_v36 = vpop.f32.mrb[0].mxu1 }
 0x35d   : > { %v1213_v35 = vmul.f32 %v1211_v33, %v1201_v36  ;;  %v1203_v29 = vpop.f32.mrb[1].mxu1 }
 0x35e   : > { %v1214_v50 = vmul.f32 %v1211_v33, %v1203_v29  ;;  %v1205_v63 = vpop.f32.mrb[2].mxu1 }
 0x35f   : > { %v1220_v4 = vadd.f32 %v1218_v58, %v1213_v35  ;;  %v1206_v18 = vpop.f32.mrb[3].mxu1 }
 0x360   : > { %v1221_v11 = vadd.f32 %v1218_v58, %v1214_v50 }
 0x361   : > { %v1222_v15 = vmul.f32 0.01, %v1220_v4 }
 0x362   : > { %v1223_v0 = vmul.f32 0.01, %v1221_v11 }
 0x363   : > { %v1224_v59 = vmax.f32 %v1220_v4, %v1222_v15 }
 0x364   : > { %v1225_v60 = vmax.f32 %v1221_v11, %v1223_v0 }
 0x365   : > { %v1226_v37 = vpack.c.bf16 %v1224_v59, %v1224_v59 }
 0x366   : > { %v1227_v51 = vpack.c.bf16 %v1225_v60, %v1225_v60 }
 0x367   : > { %1233 = vrot.lane.b32.xlu1 %v1226_v37, %s1786_s21 }
 0x368   : > { %1235 = vrot.lane.b32.xlu0 %v1227_v51, %s1786_s21  ;;  %s2750_s21 = smov 110  }
 0x3d9   : > { %v1234_v24 = vpop.permute.xlu1 %1233 }
 0x3da   : > { %v2517_v31 = vsel %vm540_vm8, 0, %v1234_v24  ;;  %v1236_v30 = vpop.permute.xlu0 %1235 }
 0x3db   : > { %v1243_v6 = vsel %vm540_vm8, %v1236_v30, 0  ;;  %1300 = vrot.lane.b32.xlu0 %v2517_v31, %s1787_s23  ;;  %v1247_v27 = vsel %vm2741_vm14, %v2517_v31, 0  ;;  %v1264_v52 = vrot.slane %v2517_v31, 4  ;;  %v1237_v62 = vsel %vm540_vm8, %v1234_v24, %v1236_v30 }
 0x3dc   : > { %1304 = vrot.lane.b32.xlu1 %v1243_v6, %s1787_s23  ;;  %v1249_v1 = vsel %vm2742_vm1, %v1243_v6, 0  ;;  %v1248_v49 = vsel %vm2743_vm2, %v1237_v62, 0  ;;  %v1258_v39 = vsel %vm2744_vm5, %v1243_v6, 0  ;;  %v1257_v28 = vsel %vm2745_vm9, %v1237_v62, 0 }
 0x3dd   : > { %v1265_v23 = vrot.slane %v1237_v62, 4  ;;  %vm2746_vm8 = vcmp.ne.s16.totalorder %v1970_v41, 0  ;;  %v1266_v54 = vrot.slane %v1243_v6, 4  ;;  %v1253_v46 = vsel %vm2747_vm6, %v2517_v31, 0 }
 0x3de   : > { %v1250_v40 = vsel %vm2746_vm8, %v2517_v31, 0  ;;  %v1311_v9 = vrot.slane %v1253_v46, 4  ;;  %v1251_v53 = vsel %vm2748_vm3, %v1237_v62, 0  ;;  %vm2749_vm14 = vcmp.ne.s16.totalorder %v1972_v42, 0 }
 0x3df   : > { %1278 = vrot.lane.b32.xlu0 %v1247_v27, %s1788_s27  ;;  %v1289_v17 = vrot.slane %v1250_v40, 4  ;;  %v1252_v41 = vsel %vm2749_vm14, %v1243_v6, 0  ;;  %v1290_v38 = vrot.slane %v1251_v53, 4  ;;  %vm2751_vm1 = vcmp.ne.s16.totalorder %v2250_v32, 0 }
 0x3e0   : > { %1267 = vrot.lane.b32.xlu1 %v1264_v52, %s1791_s16  ;;  %v1291_v25 = vrot.slane %v1252_v41, 4  ;;  %v1254_v10 = vsel %vm2751_vm1, %v1237_v62, 0  ;;  %vm2752_vm2 = vcmp.ne.s16.totalorder %v1976_v44, 0  ;;  %vm2753_vm5 = vcmp.ne.s16.totalorder %v1978_v45, 0  ;;  %v1228_v41 = vld [vmem:[%s2675_s6] sm:$0xf] }
 0x3e1   : > { %v1255_v43 = vsel %vm2752_vm2, %v1243_v6, 0  ;;  %v1312_v2 = vrot.slane %v1254_v10, 4  ;;  %v1256_v42 = vsel %vm2753_vm5, %v2517_v31, 0  ;;  %vm2754_vm9 = vcmp.ne.s16.totalorder %v1982_v47, 0  ;;  %v1229_v47 = vld [vmem:[%s2676_s7] sm:$0xff] }
 0x3e2   : > { %v1313_v61 = vrot.slane %v1255_v43, 4  ;;  %v1259_v44 = vsel %vm2754_vm9, %v2517_v31, 0  ;;  %vm2755_vm8 = vcmp.ne.s16.totalorder %v1984_v48, 0  ;;  %vm2756_vm6 = vcmp.ne.s16.totalorder %v2118_v5, 0 }
 0x3e3   : > { %1302 = vrot.lane.b32.xlu0 %v1237_v62, %s1787_s23  ;;  %v1261_v32 = vsel %vm2755_vm8, %v1243_v6, 0  ;;  %v1260_v45 = vsel %vm2756_vm6, %v1237_v62, 0  ;;  %v1246_v16 = vsel %vm574_vm11, %v1237_v62, 0  ;;  %vm2757_vm3 = vcmp.ne.s16.totalorder %v1946_v21, 0 }
 0x3e4   : > { %1282 = vrot.lane.b32.xlu1 %v1249_v1, %s1788_s27  ;;  %v1245_v36 = vsel %vm2757_vm3, %v2517_v31, 0  ;;  %vm2758_vm11 = vcmask 908288  }
 0x3e7   : > { %1280 = vrot.lane.b32.xlu0 %v1248_v49, %s1788_s27  ;;  %s2627_s27 = scalar_lea.hbm %s2678_s9, %s1589_s24 }
 0x3e8   : > { %1329 = vrot.lane.b32.xlu1 %v1258_v39, %s1789_s29 }
 0x3eb   : > { %1327 = vrot.lane.b32.xlu0 %v1257_v28, %s1789_s29 }
 0x3ec   : > { %1269 = vrot.lane.b32.xlu1 %v1265_v23, %s1791_s16 }
 0x3ef   : > { %1271 = vrot.lane.b32.xlu0 %v1266_v54, %s1791_s16 }
 0x3f0   : > { %1292 = vrot.lane.b32.xlu1 %v1289_v17, %s1793_s22 }
 0x3f3   : > { %1335 = vrot.lane.b32.xlu0 %v1265_v23, %s1790_s14 }
 0x3f4   : > { %1314 = vrot.lane.b32.xlu1 %v1311_v9, %s2750_s21 }
 0x3f7   : > { %1294 = vrot.lane.b32.xlu0 %v1290_v38, %s1793_s22 }
 0x3f8   : > { %1296 = vrot.lane.b32.xlu1 %v1291_v25, %s1793_s22  ;;  %s353_s22 = sand.u32 1, %s1767_s10  }
 0x3fb   : > { %1316 = vrot.lane.b32.xlu0 %v1312_v2, %s2750_s21 }
 0x3fc   : > { %1318 = vrot.lane.b32.xlu1 %v1313_v61, %s2750_s21 }
 0x3ff   : > { %1325 = vrot.lane.b32.xlu0 %v1256_v42, %s1789_s29  ;;  %s1456_s29 = scalar_lea.sflag [#allocation4], %s353_s22 }
 0x400   : > { %1337 = vrot.lane.b32.xlu1 %v1266_v54, %s1790_s14 }
 0x403   : > { %1344 = vrot.lane.b32.xlu0 %v1259_v44, %s1794_s25 }
 0x404   : > { %1333 = vrot.lane.b32.xlu1 %v1264_v52, %s1790_s14  ;;  %s1713_s14 = sshll.u32 %s1795_s13, 4  ;;  %s1714_s14 = int_to_ptr.vmem [resolvable:$false] %s1713_s14 }
 0x405   : > { %s1715_s17 = scalar_lea.vmem %s1714_s14, 512 }
 0x407   : > { %1348 = vrot.lane.b32.xlu0 %v1261_v32, %s1794_s25 }
 0x408   : > { %1346 = vrot.lane.b32.xlu1 %v1260_v45, %s1794_s25  ;;  %s1559_s25 = sshll.u32 %s353_s22, 4 }
 0x409   : > { %s355_s26 = scalar_lea.vmem [#allocation5], %s1559_s25 }
 0x40a   : > { %s1470_s28 = sshll.u32 %s355_s26, 4  ;;  %s2629_s28 = int_to_ptr.vmem [resolvable:$true] %s1470_s28 }
 0x40b   : > { %1444 = vperm.xlu0 %1662, %v1230_v8   ;;  %s1709_s16 = scalar_lea.vmem %s2629_s28, 256  ;;  %p1716_p2 = scmp.lt.s32.totalorder %s2629_s28, %s1714_s14 }
 0x40c   : > { %1437 = vperm.xlu1 %1663, %v1229_v47   ;;  %p1710_p6 = scmp.ne.s32.totalorder %s2629_s28, %s1709_s16  ;;  %p1717_p3 = scmp.lt.s32.totalorder %s1715_s17, %s1709_s16 }
 0x40e   : > { %p1711_p10 = pnand %p1710_p6, %p2762_p9  ;;  %p1718_p4 = por %p1717_p3, %p1716_p2 }
 0x410   : > { %p1712_p12 = pneg %p1711_p10 }
 0x412   : > { %p1719_p7 = pnand %p1718_p4, %p1712_p12 }
 0x44d   : > { %v1301_v19 = vpop.permute.xlu0 %1300 }
 0x44e   : > { %v1305_v48 = vpop.permute.xlu1 %1304 }
 0x451   : > { %v1279_v7 = vpop.permute.xlu0 %1278 }
 0x452   : > { %v1268_v3 = vpop.permute.xlu1 %1267 }
 0x455   : > { %v1303_v26 = vpop.permute.xlu0 %1302 }
 0x456   : > { %v1283_v22 = vpop.permute.xlu1 %1282  ;;  %v1307_v37 = vsel %vm2758_vm11, %v1303_v26, %v1305_v48 }
 0x459   : > { %v1281_v5 = vpop.permute.xlu0 %1280 }
 0x45a   : > { %v1330_v56 = vpop.permute.xlu1 %1329  ;;  %v1285_v18 = vsel %vm773_vm4, %v1281_v5, %v1283_v22  ;;  %v1284_v11 = vsel %vm773_vm4, %v1279_v7, %v1281_v5  ;;  %vm2760_vm4 = vcmask 785408  }
 0x45d   : > { %v1328_v34 = vpop.permute.xlu0 %1327 }
 0x45e   : > { %v1270_v12 = vpop.permute.xlu1 %1269  ;;  %v1332_v52 = vsel %vm2760_vm4, %v1328_v34, %v1330_v56 }
 0x45f   : > { %v1273_v13 = vsel %vm734_vm13, %v1268_v3, %v1270_v12 }
 0x460   : > { %v1354_v58 = vsel %vm484_vm7, %v1245_v36, %v1273_v13 }
 0x461   : > { %v1272_v14 = vpop.permute.xlu0 %1271 }
 0x462   : > { %v1274_v57 = vsel %vm734_vm13, %v1270_v12, %v1272_v14  ;;  %v1293_v55 = vpop.permute.xlu1 %1292  ;;  %vm2759_vm13 = vmmov %vm2758_vm11 }
 0x463   : > { %v1358_v33 = vsel %vm484_vm7, %v1246_v16, %v1274_v57  ;;  %v1306_v24 = vsel %vm2759_vm13, %v1301_v19, %v1303_v26 }
 0x464   : > { %1394 = vmatprep.subr.bf16.mxu0 %v1358_v33 }
 0x465   : > { %1395 = vmatpush1.bf16.msra.mxu0 %v1354_v58  ;;  %v1336_v35 = vpop.permute.xlu0 %1335 }
 0x466   : > { %v1315_v29 = vpop.permute.xlu1 %1314 }
 0x469   : > { %v1295_v50 = vpop.permute.xlu0 %1294 }
 0x46a   : > { %v1298_v63 = vsel %vm850_vm0, %v1293_v55, %v1295_v50  ;;  %v1297_v4 = vpop.permute.xlu1 %1296 }
 0x46b   : > { %v1299_v20 = vsel %vm850_vm0, %v1295_v50, %v1297_v4  ;;  %v1362_v0 = vsel %vm484_vm7, %v1284_v11, %v1298_v63  ;;  %vm2761_vm0 = vmmov %vm2760_vm4 }
 0x46c   : > { %v1366_v15 = vsel %vm484_vm7, %v1285_v18, %v1299_v20 }
 0x46d   : > { %1396 = vmatprep.subr.bf16.mxu0 %v1366_v15  ;;  %v1317_v21 = vpop.permute.xlu0 %1316 }
 0x46e   : > { %v1320_v59 = vsel %vm964_vm10, %v1315_v29, %v1317_v21  ;;  %v1319_v60 = vpop.permute.xlu1 %1318  ;;  %1397 = vmatpush1.bf16.msra.mxu0 %v1362_v0 }
 0x46f   : > { %v1321_v51 = vsel %vm964_vm10, %v1317_v21, %v1319_v60  ;;  %v1370_v6 = vsel %vm484_vm7, %v1306_v24, %v1320_v59 }
 0x470   : > { %v1374_v31 = vsel %vm484_vm7, %v1307_v37, %v1321_v51 }
 0x471   : > { %1398 = vmatprep.subr.bf16.mxu0 %v1374_v31  ;;  %v1326_v30 = vpop.permute.xlu0 %1325 }
 0x472   : > { %v1338_v27 = vpop.permute.xlu1 %1337  ;;  %1399 = vmatpush1.bf16.msra.mxu0 %v1370_v6  ;;  %v1331_v28 = vsel %vm2761_vm0, %v1326_v30, %v1328_v34 }
 0x473   : > { %v1340_v62 = vsel %vm1044_vm15, %v1336_v35, %v1338_v27 }
 0x474   : > { %v1382_v1 = vsel %vm484_vm7, %v1332_v52, %v1340_v62 }
 0x475   : > { %1400 = vmatprep.subr.bf16.mxu0 %v1382_v1  ;;  %v1345_v49 = vpop.permute.xlu0 %1344 }
 0x476   : > { %v1334_v39 = vpop.permute.xlu1 %1333 }
 0x477   : > { %v1339_v23 = vsel %vm1044_vm15, %v1334_v39, %v1336_v35  ;;  %vm1384_vm15 = vcmask 588800  }
 0x478   : > { %v1378_v40 = vsel %vm484_vm7, %v1331_v28, %v1339_v23 }
 0x479   : > { %1401 = vmatpush1.bf16.msra.mxu0 %v1378_v40  ;;  %v1349_v54 = vpop.permute.xlu0 %1348 }
 0x47a   : > { %v1347_v17 = vpop.permute.xlu1 %1346 }
 0x47b   : > { %v1350_v46 = vsel %vm1089_vm12, %v1345_v49, %v1347_v17  ;;  %v1351_v9 = vsel %vm1089_vm12, %v1347_v17, %v1349_v54 }
 0x47c   : > { %v1389_v53 = vsel %vm484_vm7, %v1350_v46, 0  ;;  %1580 = vmatprep.subr.msk.bf16.mxu0 %vm484_vm7, %v1351_v9 }
 0x47d   : > { %1403 = vmatpush1.bf16.msra.mxu0 %v1389_v53 }
 0x480   : > { %1581 = vmatmul.mubr.msk.bf16.vlgmr.msra.gmra.mrb[4].mxu0 %vm1384_vm15, %v1228_v41 }
 0x48a   : > { %v1445_v2 = vpop.permute.xlu0 %1444 }
 0x48b   : > { %v1438_v38 = vpop.permute.xlu1 %1437 }
 0x553   : > { %v1428_v25 = vpop.f32.mrb[4].mxu0 }
 0x554   : > { %v1440_v10 = vmul.f32 %v1438_v38, %v1428_v25  ;;  %v1430_v43 = vpop.f32.mrb[5].mxu0 }
 0x555   : > { %v1441_v61 = vmul.f32 %v1438_v38, %v1430_v43  ;;  %v1432_v42 = vpop.f32.mrb[6].mxu0 }
 0x556   : > { %v1447_v44 = vadd.f32 %v1445_v2, %v1440_v10  ;;  %v1433_v32 = vpop.f32.mrb[7].mxu0 }
 0x557   : > { %v1448_v45 = vadd.f32 %v1445_v2, %v1441_v61 }
 0x558   : > { %v1449_v8 = vmul.f32 0.01, %v1447_v44 }
 0x559   : > { %v1450_v47 = vmul.f32 0.01, %v1448_v45 }
 0x55a   : > { %v1451_v19 = vmax.f32 %v1447_v44, %v1449_v8 }
 0x55b   : > { %v1452_v48 = vmax.f32 %v1448_v45, %v1450_v47 }
 0x55c   : > { %1453 = vst [vmem:[%s355_s26] sm:$0xff] %v1451_v19 }
 0x55d   : > { %1454 = vst [vmem:[%s355_s26 + $0x8] sm:$0xff] %v1452_v48 }
 0x55e   : > { %1722 = shalt.err (!%p1719_p7)
}
 0x55f   : > { %s1723_s22 = scalar_lea.hbm %s2627_s27, 256  ;;  %s1727_s26 = scalar_lea.hbm %s2678_s9, 512 }
 0x560   : > { %p1724_p8 = scmp.ne.s32.totalorder %s2627_s27, %s1723_s22  ;;  %p1728_p1 = scmp.lt.u32.totalorder %s2627_s27, %s2678_s9 }
 0x561   : > { %p1729_p0 = scmp.lt.u32.totalorder %s1727_s26, %s1723_s22  ;;  %p1731_p6 = scmp.lt.u32.totalorder %s1723_s22, %s2627_s27 }
 0x562   : > { %p1725_p11 = pnand %p1724_p8, %p2762_p9 }
 0x563   : > { %p1730_p5 = por %p1729_p0, %p1728_p1 }
 0x564   : > { %p1726_p13 = pneg %p1725_p11 }
 0x565   : > { %p1732_p10 = por %p1731_p6, %p1730_p5 }
 0x567   : > { %p1733_p12 = pnand %p1732_p10, %p1726_p13 }
 0x569   : > { %1736 = shalt.err (!%p1733_p12)
}
 0x56a   : > { %1594 = dma.vmem_to_hbm [thread:$0]  (%p2762_p9), %s2629_s28, 256, %s2627_s27, %s1456_s29  }
 0x56b PF: > { %p1606_p2 = scmp.ge.s32.totalorder %s1775_s12, 2  ;;  %s1482_s16 = sand.u32 1, %s1763_s30  }
 0x56c   : > { %p2763_p3 = scmp.ne.s32.totalorder %s2716_s20, 0  ;;  %s1483_s13 = scalar_lea.sflag [#allocation4], %s1482_s16 }
 0x56e   : > { %p1601_p4 = pnand %p1606_p2, %p2763_p3 }
 0x570   : > { %1758 = dma.done.wait (!%p1601_p4), %s1483_s13, 256  }
 0x571   : > { %1760 = vsyncadd (!%p1601_p4), %s1483_s13, 4294967040  ;;  %p20_p7 = scmp.ge.s32.totalorder %s1871_s15, 4   ;;  %s2764_s30 = smov %s1767_s10 }
 0x572   : > { %s2765_s10 = smov %s1771_s11  ;;  %s2766_s11 = smov %s1882_s18 }
 0x573   : > { %s2767_s12 = smov %s1871_s15  ;;  %22 = sbr.rel (!%p20_p7) target bundleno = 4 (0x4), region = 99 }
 0x57a   :  { %1488 = vsyncpa [#allocation3], 1 }
 0x57b   :  { %1490 = vsyncpa [#allocation3 + $0x1], 1 }
 0x57c   :  { %1491 = vsyncpa [#allocation4], 1 }
 0x57d   :  { %1493 = vsyncpa [#allocation4 + $0x1], 1 }

</bundles_post_ra>
